<compile_context>
chip_gen: v7x
topology: tpu7x:2x2x1
jax: 0.10.0
libtpu: 0.0.40
codegen_flags: <defaults>
</compile_context>

<pallas_src>
import jax
import jax.numpy as jnp
from jax import lax
from jax.experimental import pallas as pl
from jax.experimental.pallas import tpu as pltpu

_LANES = 128       # lane width; also the lane-fold accumulator width
_NUM_OUT = 9       # per-batch partial sums packed into lanes 0..8 of the output


def _stand_nst_kernel(s_ref, t_ref, out_ref,
                      gss, gtt, gst,
                      p1s, p2s, p3s, p1t, p2t, p3t, pst, pkl):
    j = pl.program_id(1)
    nj = pl.num_programs(1)
    C, TN = s_ref.shape
    W = p1s.shape[-1]                      # lane-fold width (128)

    # ---- per-batch reset of the persistent VMEM accumulators --------------
    @pl.when(j == 0)
    def _init():
        for r in (gss, gtt, gst, p1s, p2s, p3s, p1t, p2t, p3t, pst, pkl):
            r[...] = jnp.zeros_like(r)

    s = s_ref[...].astype(jnp.float32)     # (C, TN)
    t = t_ref[...].astype(jnp.float32)

    # ---- grams on the MXU: bf16 inputs, f32 accumulation.  Only SS/TT/ST
    #      blocks are needed (TS == ST^T); no stacked concat.  For small C
    #      the kernel is streaming-bound so the 3 small matmuls are free;
    #      for large C this is 25% fewer MXU tiles + 25% less gram scratch.
    s_bf = s_ref[...].astype(jnp.bfloat16)
    t_bf = t_ref[...].astype(jnp.bfloat16)
    dn = (((1,), (1,)), ((), ()))
    gss[...] += lax.dot_general(s_bf, s_bf, dn, preferred_element_type=jnp.float32)
    gtt[...] += lax.dot_general(t_bf, t_bf, dn, preferred_element_type=jnp.float32)
    gst[...] += lax.dot_general(s_bf, t_bf, dn, preferred_element_type=jnp.float32)

    # ---- lane-deferred raw power sums (full-vreg VPU adds only; the single
    #      cross-lane collapse happens once per batch at finalize). ----------
    def fold(v):                           # (C, TN) -> (C, W)
        acc = v[:, 0:W]
        for g in range(1, TN // W):
            acc = acc + v[:, g * W:(g + 1) * W]
        return acc

    s2 = s * s
    t2 = t * t
    p1s[...] += fold(s)
    p2s[...] += fold(s2)
    p3s[...] += fold(s2 * s)
    p1t[...] += fold(t)
    p2t[...] += fold(t2)
    p3t[...] += fold(t2 * t)
    pst[...] += fold(s * t)

    # ---- SoftTarget KL with only two full-size exps:
    #      sum_c p_t*(logp_t - logp_s) = sum_c p_t*(t_sh - s_sh + logZs - logZt)
    s_sh = s - jnp.max(s, axis=0, keepdims=True)
    t_sh = t - jnp.max(t, axis=0, keepdims=True)
    e_s = jnp.exp(s_sh)
    e_t = jnp.exp(t_sh)
    zs = jnp.sum(e_s, axis=0, keepdims=True)        # (1, TN)
    zt = jnp.sum(e_t, axis=0, keepdims=True)
    inv_zt = 1.0 / zt
    log_ratio = jnp.log(zs * inv_zt)                # logZs - logZt, (1, TN)
    kl_elem = (e_t * inv_zt) * (t_sh - s_sh + log_ratio)
    pkl[...] += fold(kl_elem)

    # ---- batch finalize: collapse accumulators, write this batch's row ----
    @pl.when(j == nj - 1)
    def _finalize():
        eps2 = jnp.float32(1e-24)                   # (F.normalize eps)^2
        pw2s = jnp.sum(p2s[...], axis=-1, keepdims=True)    # (C,1)  sum s^2
        pw2t = jnp.sum(p2t[...], axis=-1, keepdims=True)
        inv_s = lax.rsqrt(jnp.maximum(pw2s, eps2))           # 1/max(||s||,1e-12)
        inv_t = lax.rsqrt(jnp.maximum(pw2t, eps2))
        u_s = inv_s * inv_s                                  # (C,1)
        u_t = inv_t * inv_t

        # row-vector copies of u (diag trick: no transpose, no extra matmul)
        ii = lax.broadcasted_iota(jnp.int32, (C, C), 0)
        jj = lax.broadcasted_iota(jnp.int32, (C, C), 1)
        eye_f = (ii == jj).astype(jnp.float32)
        u_s_row = jnp.sum(eye_f * u_s, axis=0, keepdims=True)   # (1,C)
        u_t_row = jnp.sum(eye_f * u_t, axis=0, keepdims=True)

        # sum of squared *normalized* gram entries per block
        q_ss = jnp.sum(gss[...] * gss[...] * u_s * u_s_row)
        q_tt = jnp.sum(gtt[...] * gtt[...] * u_t * u_t_row)
        q_st = jnp.sum(gst[...] * gst[...] * u_s * u_t_row)
        orig_b = 0.5 * (q_ss + q_tt) - q_st

        # moments of the normalized rows from raw power sums
        s1 = jnp.sum(p1s[...], axis=-1, keepdims=True)
        s3 = jnp.sum(p3s[...], axis=-1, keepdims=True)
        t1 = jnp.sum(p1t[...], axis=-1, keepdims=True)
        t3 = jnp.sum(p3t[...], axis=-1, keepdims=True)
        stv = jnp.sum(pst[...], axis=-1, keepdims=True)
        m1s = jnp.sum(s1 * inv_s)                 # sum s_n
        m2s = jnp.sum(pw2s * u_s)                 # sum s_n^2
        m3s = jnp.sum(s3 * u_s * inv_s)           # sum s_n^3
        m1t = jnp.sum(t1 * inv_t)
        m2t = jnp.sum(pw2t * u_t)
        m3t = jnp.sum(t3 * u_t * inv_t)
        mst = jnp.sum(stv * inv_s * inv_t)        # sum s_n * t_n (kept f32 exact)
        kl_b = jnp.sum(pkl[...])

        vals = (orig_b, m1s, m2s, m3s, m1t, m2t, m3t, mst, kl_b)
        lane = lax.broadcasted_iota(jnp.int32, (1, _LANES), 1)
        packed = jnp.zeros((1, _LANES), jnp.float32)
        for k, v in enumerate(vals):
            packed = packed + v * (lane == k).astype(jnp.float32)
        out_ref[...] = packed


def _vmem_capacity_bytes():
    try:
        return int(pltpu.get_tpu_info().vmem_capacity_bytes)
    except Exception:
        return 64 * 1024 * 1024            # conservative default (v7x per-core)


def _pick_tn(n_pad, c, itemsize, vmem_cap):
    """Largest lane-dense N tile dividing n_pad that fits the VMEM budget."""
    # per lane-column: 2 inputs x 2 pipeline buffers x C x itemsize
    #                  + ~12 full-size f32 per-step temporaries.
    per_col = 2 * 2 * c * itemsize + 12 * c * 4
    fixed = 3 * c * c * 4 + 8 * c * _LANES * 4 + (2 << 20)
    budget = int(0.55 * vmem_cap) - fixed
    cap = max(_LANES, budget // max(per_col, 1))
    cap = min(cap, 4096, n_pad)            # 4096 bounds the unrolled fold loop
    best = _LANES
    d = _LANES
    while d <= cap:
        if n_pad % d == 0:
            best = d
        d += _LANES
    return best


def stand_nst_loss(fm_s, fm_t, *, tn=None):
    """STandNST.forward(fm_s, fm_t) — NSTa loss + SoftTarget KL (scalar)."""
    B, C, H, W = fm_s.shape
    N = H * W
    s = fm_s.reshape(B, C, N)
    t = fm_t.reshape(B, C, N)

    # zero-pad spatial axis to a multiple of 128: zero columns contribute 0 to
    # grams / power sums and identical padded columns give exactly 0 KL.
    n_pad = ((N + _LANES - 1) // _LANES) * _LANES
    if n_pad != N:
        pad = ((0, 0), (0, 0), (0, n_pad - N))
        s = jnp.pad(s, pad)
        t = jnp.pad(t, pad)

    itemsize = jnp.dtype(fm_s.dtype).itemsize
    vmem_cap = _vmem_capacity_bytes()
    TN = _pick_tn(n_pad, C, itemsize, vmem_cap) if tn is None else tn
    assert n_pad % TN == 0 and TN % _LANES == 0
    nt = n_pad // TN

    need = (3 * C * C * 4 + 8 * C * _LANES * 4
            + (2 * 2 * C * itemsize + 12 * C * 4) * TN + (4 << 20))
    vmem_limit = max(32 << 20, min(int(0.9 * vmem_cap), int(1.5 * need)))

    cost = pl.CostEstimate(
        flops=int(6 * B * C * C * n_pad + 30 * B * C * n_pad),
        transcendentals=int(2 * B * C * n_pad + 2 * B * n_pad),
        bytes_accessed=int(2 * B * C * n_pad * itemsize + B * _LANES * 4))

    grid_spec = pltpu.PrefetchScalarGridSpec(
        num_scalar_prefetch=0,
        grid=(B, nt),
        in_specs=[pl.BlockSpec((None, C, TN), lambda b, j: (b, 0, j)),
                  pl.BlockSpec((None, C, TN), lambda b, j: (b, 0, j))],
        out_specs=pl.BlockSpec((None, 1, _LANES), lambda b, j: (b, 0, 0)),
        scratch_shapes=[
            pltpu.VMEM((C, C), jnp.float32),        # G_ss
            pltpu.VMEM((C, C), jnp.float32),        # G_tt
            pltpu.VMEM((C, C), jnp.float32),        # G_st
            pltpu.VMEM((C, _LANES), jnp.float32),   # sum s
            pltpu.VMEM((C, _LANES), jnp.float32),   # sum s^2
            pltpu.VMEM((C, _LANES), jnp.float32),   # sum s^3
            pltpu.VMEM((C, _LANES), jnp.float32),   # sum t
            pltpu.VMEM((C, _LANES), jnp.float32),   # sum t^2
            pltpu.VMEM((C, _LANES), jnp.float32),   # sum t^3
            pltpu.VMEM((C, _LANES), jnp.float32),   # sum s*t
            pltpu.VMEM((C, _LANES), jnp.float32),   # KL partial
        ])

    res = pl.pallas_call(
        _stand_nst_kernel,
        out_shape=jax.ShapeDtypeStruct((B, 1, _LANES), jnp.float32),
        grid_spec=grid_spec,
        compiler_params=pltpu.CompilerParams(
            dimension_semantics=("parallel", "arbitrary"),
            vmem_limit_bytes=vmem_limit),
        cost_estimate=cost,
    )(s, t)

    acc = jnp.sum(res[:, 0, :_NUM_OUT], axis=0)     # fold per-batch partials

    # ---- cheap final scalar combination (in the wrapper) -------------------
    n = float(B * C * N)
    orig = acc[0] / float(B * C * C)

    mu_s = acc[1] / n
    mu_t = acc[4] / n
    m2_s = acc[2] - n * mu_s * mu_s
    m3_s = acc[3] - 3.0 * mu_s * acc[2] + 2.0 * n * mu_s ** 3
    m2_t = acc[5] - n * mu_t * mu_t
    m3_t = acc[6] - 3.0 * mu_t * acc[5] + 2.0 * n * mu_t ** 3
    coef = n * (n - 1.0) ** 0.5 / (n - 2.0)          # pandas Series.skew coefficient
    skew_s = coef * m3_s / (m2_s * jnp.sqrt(m2_s))
    skew_t = coef * m3_t / (m2_t * jnp.sqrt(m2_t))
    loss_skew = jnp.abs(skew_s - skew_t)

    cov = (acc[7] - n * mu_s * mu_t) / (n - 1.0)     # np.cov(s, t)[0, 1], ddof=1
    loss_cov = jnp.abs(cov)

    kl = acc[8] / float(B)                           # F.kl_div, reduction='batchmean'

    return orig + 0.25 * loss_cov + 0.2 * loss_skew + kl


def stand_nst_ref(fm_s, fm_t):
    """Pure-JAX reference mirroring the PyTorch/numpy/pandas math (f32)."""
    B, C, H, W = fm_s.shape
    n = float(B * C * H * W)
    s = fm_s.reshape(B, C, -1).astype(jnp.float32)
    t = fm_t.reshape(B, C, -1).astype(jnp.float32)
    s_n = s / jnp.maximum(jnp.linalg.norm(s, axis=2, keepdims=True), 1e-12)
    t_n = t / jnp.maximum(jnp.linalg.norm(t, axis=2, keepdims=True), 1e-12)

    def poly_mean(a, b):   # poly_kernel(a, b).mean()
        g = jnp.einsum('bik,bjk->bij', b, a, precision=jax.lax.Precision.HIGHEST)
        return jnp.mean(g * g)

    orig = 0.5 * (poly_mean(t_n, t_n) + poly_mean(s_n, s_n)
                  - 2.0 * poly_mean(s_n, t_n))

    sf = s_n.reshape(-1)
    tf = t_n.reshape(-1)

    def skew(x):
        d = x - jnp.mean(x)
        m2 = jnp.sum(d * d)
        m3 = jnp.sum(d * d * d)
        return n * (n - 1.0) ** 0.5 / (n - 2.0) * m3 / (m2 * jnp.sqrt(m2))

    loss_skew = jnp.abs(skew(sf) - skew(tf))
    cov = jnp.sum((sf - jnp.mean(sf)) * (tf - jnp.mean(tf))) / (n - 1.0)

    logp_s = jax.nn.log_softmax(fm_s.astype(jnp.float32), axis=1)
    logp_t = jax.nn.log_softmax(fm_t.astype(jnp.float32), axis=1)
    p_t = jnp.exp(logp_t)
    kl = jnp.sum(p_t * (logp_t - logp_s)) / float(B)

    return orig + 0.25 * jnp.abs(cov) + 0.2 * loss_skew + kl


if __name__ == "__main__":
    key = jax.random.PRNGKey(0)
    k1, k2 = jax.random.split(key)
    # STandNST has no learnable parameters; inputs are two NCHW feature maps.
    fm_s = jax.random.normal(k1, (2, 4, 16, 16), dtype=jnp.float32)
    fm_t = jax.random.normal(k2, (2, 4, 16, 16), dtype=jnp.float32)

    out = jax.block_until_ready(stand_nst_loss(fm_s, fm_t))
    ref = jax.block_until_ready(stand_nst_ref(fm_s, fm_t))

    assert bool(jnp.isfinite(out)), out
    assert abs(float(out) - float(ref)) < 1e-3 + 2e-3 * abs(float(ref)), (out, ref)
    print("KERNEL_OK")
</pallas_src>

<mosaic_0001>
module attributes {stable_mosaic.version = 11 : i64} {
  func.func @_stand_nst_kernel(%arg0: i32, %arg1: i32, %arg2: memref<1x4x256xf32, #tpu.memory_space<vmem>>, %arg3: memref<1x4x256xf32, #tpu.memory_space<vmem>>, %arg4: memref<1x1x128xf32, #tpu.memory_space<vmem>>, %arg5: memref<4x4xf32, #tpu.memory_space<vmem>>, %arg6: memref<4x4xf32, #tpu.memory_space<vmem>>, %arg7: memref<4x4xf32, #tpu.memory_space<vmem>>, %arg8: memref<4x128xf32, #tpu.memory_space<vmem>>, %arg9: memref<4x128xf32, #tpu.memory_space<vmem>>, %arg10: memref<4x128xf32, #tpu.memory_space<vmem>>, %arg11: memref<4x128xf32, #tpu.memory_space<vmem>>, %arg12: memref<4x128xf32, #tpu.memory_space<vmem>>, %arg13: memref<4x128xf32, #tpu.memory_space<vmem>>, %arg14: memref<4x128xf32, #tpu.memory_space<vmem>>, %arg15: memref<4x128xf32, #tpu.memory_space<vmem>>) attributes {dimension_semantics = [#tpu.dimension_semantics<parallel>, #tpu.dimension_semantics<arbitrary>], iteration_bounds = array<i64: 2, 1>, scalar_prefetch = 0 : i64, scratch_operands = 11 : i64, tpu.core_type = #tpu.core_type<tc>, window_params = [{transform_indices = @transform_0, window_bounds = array<i64: 1, 4, 256>}, {transform_indices = @transform_1, window_bounds = array<i64: 1, 4, 256>}, {transform_indices = @transform_2, window_bounds = array<i64: 1, 1, 128>}]} {
    %c0_i32 = arith.constant 0 : i32
    %0 = arith.cmpi eq, %arg1, %c0_i32 : i32
    %1 = arith.extui %0 : i1 to i32
    %c0_i32_0 = arith.constant 0 : i32
    %2 = arith.cmpi ne, %1, %c0_i32_0 : i32
    scf.if %2 {
      %cst_65 = arith.constant 0.000000e+00 : f32
      %105 = vector.broadcast %cst_65 : f32 to vector<4x4xf32>
      %c0_66 = arith.constant 0 : index
      %c0_67 = arith.constant 0 : index
      %106 = vector.load %arg5[%c0_66, %c0_67] : memref<4x4xf32, #tpu.memory_space<vmem>>, vector<4x4xf32>
      tpu.vector_store %arg5[%c0_66, %c0_67], %105 {strides = array<i32>} : memref<4x4xf32, #tpu.memory_space<vmem>>, vector<4x4xf32>,
      %cst_68 = arith.constant 0.000000e+00 : f32
      %107 = vector.broadcast %cst_68 : f32 to vector<4x4xf32>
      %c0_69 = arith.constant 0 : index
      %c0_70 = arith.constant 0 : index
      %108 = vector.load %arg6[%c0_69, %c0_70] : memref<4x4xf32, #tpu.memory_space<vmem>>, vector<4x4xf32>
      tpu.vector_store %arg6[%c0_69, %c0_70], %107 {strides = array<i32>} : memref<4x4xf32, #tpu.memory_space<vmem>>, vector<4x4xf32>,
      %cst_71 = arith.constant 0.000000e+00 : f32
      %109 = vector.broadcast %cst_71 : f32 to vector<4x4xf32>
      %c0_72 = arith.constant 0 : index
      %c0_73 = arith.constant 0 : index
      %110 = vector.load %arg7[%c0_72, %c0_73] : memref<4x4xf32, #tpu.memory_space<vmem>>, vector<4x4xf32>
      tpu.vector_store %arg7[%c0_72, %c0_73], %109 {strides = array<i32>} : memref<4x4xf32, #tpu.memory_space<vmem>>, vector<4x4xf32>,
      %cst_74 = arith.constant 0.000000e+00 : f32
      %111 = vector.broadcast %cst_74 : f32 to vector<4x128xf32>
      %c0_75 = arith.constant 0 : index
      %c0_76 = arith.constant 0 : index
      %112 = vector.load %arg8[%c0_75, %c0_76] : memref<4x128xf32, #tpu.memory_space<vmem>>, vector<4x128xf32>
      tpu.vector_store %arg8[%c0_75, %c0_76], %111 {strides = array<i32>} : memref<4x128xf32, #tpu.memory_space<vmem>>, vector<4x128xf32>,
      %cst_77 = arith.constant 0.000000e+00 : f32
      %113 = vector.broadcast %cst_77 : f32 to vector<4x128xf32>
      %c0_78 = arith.constant 0 : index
      %c0_79 = arith.constant 0 : index
      %114 = vector.load %arg9[%c0_78, %c0_79] : memref<4x128xf32, #tpu.memory_space<vmem>>, vector<4x128xf32>
      tpu.vector_store %arg9[%c0_78, %c0_79], %113 {strides = array<i32>} : memref<4x128xf32, #tpu.memory_space<vmem>>, vector<4x128xf32>,
      %cst_80 = arith.constant 0.000000e+00 : f32
      %115 = vector.broadcast %cst_80 : f32 to vector<4x128xf32>
      %c0_81 = arith.constant 0 : index
      %c0_82 = arith.constant 0 : index
      %116 = vector.load %arg10[%c0_81, %c0_82] : memref<4x128xf32, #tpu.memory_space<vmem>>, vector<4x128xf32>
      tpu.vector_store %arg10[%c0_81, %c0_82], %115 {strides = array<i32>} : memref<4x128xf32, #tpu.memory_space<vmem>>, vector<4x128xf32>,
      %cst_83 = arith.constant 0.000000e+00 : f32
      %117 = vector.broadcast %cst_83 : f32 to vector<4x128xf32>
      %c0_84 = arith.constant 0 : index
      %c0_85 = arith.constant 0 : index
      %118 = vector.load %arg11[%c0_84, %c0_85] : memref<4x128xf32, #tpu.memory_space<vmem>>, vector<4x128xf32>
      tpu.vector_store %arg11[%c0_84, %c0_85], %117 {strides = array<i32>} : memref<4x128xf32, #tpu.memory_space<vmem>>, vector<4x128xf32>,
      %cst_86 = arith.constant 0.000000e+00 : f32
      %119 = vector.broadcast %cst_86 : f32 to vector<4x128xf32>
      %c0_87 = arith.constant 0 : index
      %c0_88 = arith.constant 0 : index
      %120 = vector.load %arg12[%c0_87, %c0_88] : memref<4x128xf32, #tpu.memory_space<vmem>>, vector<4x128xf32>
      tpu.vector_store %arg12[%c0_87, %c0_88], %119 {strides = array<i32>} : memref<4x128xf32, #tpu.memory_space<vmem>>, vector<4x128xf32>,
      %cst_89 = arith.constant 0.000000e+00 : f32
      %121 = vector.broadcast %cst_89 : f32 to vector<4x128xf32>
      %c0_90 = arith.constant 0 : index
      %c0_91 = arith.constant 0 : index
      %122 = vector.load %arg13[%c0_90, %c0_91] : memref<4x128xf32, #tpu.memory_space<vmem>>, vector<4x128xf32>
      tpu.vector_store %arg13[%c0_90, %c0_91], %121 {strides = array<i32>} : memref<4x128xf32, #tpu.memory_space<vmem>>, vector<4x128xf32>,
      %cst_92 = arith.constant 0.000000e+00 : f32
      %123 = vector.broadcast %cst_92 : f32 to vector<4x128xf32>
      %c0_93 = arith.constant 0 : index
      %c0_94 = arith.constant 0 : index
      %124 = vector.load %arg14[%c0_93, %c0_94] : memref<4x128xf32, #tpu.memory_space<vmem>>, vector<4x128xf32>
      tpu.vector_store %arg14[%c0_93, %c0_94], %123 {strides = array<i32>} : memref<4x128xf32, #tpu.memory_space<vmem>>, vector<4x128xf32>,
      %cst_95 = arith.constant 0.000000e+00 : f32
      %125 = vector.broadcast %cst_95 : f32 to vector<4x128xf32>
      %c0_96 = arith.constant 0 : index
      %c0_97 = arith.constant 0 : index
      %126 = vector.load %arg15[%c0_96, %c0_97] : memref<4x128xf32, #tpu.memory_space<vmem>>, vector<4x128xf32>
      tpu.vector_store %arg15[%c0_96, %c0_97], %125 {strides = array<i32>} : memref<4x128xf32, #tpu.memory_space<vmem>>, vector<4x128xf32>,
    } else {
    }
    %c0 = arith.constant 0 : index
    %c0_1 = arith.constant 0 : index
    %c0_2 = arith.constant 0 : index
    %3 = vector.load %arg2[%c0, %c0_1, %c0_2] : memref<1x4x256xf32, #tpu.memory_space<vmem>>, vector<1x4x256xf32>
    %4 = vector.shape_cast %3 : vector<1x4x256xf32> to vector<4x256xf32>
    %c0_3 = arith.constant 0 : index
    %c0_4 = arith.constant 0 : index
    %c0_5 = arith.constant 0 : index
    %5 = vector.load %arg3[%c0_3, %c0_4, %c0_5] : memref<1x4x256xf32, #tpu.memory_space<vmem>>, vector<1x4x256xf32>
    %6 = vector.shape_cast %5 : vector<1x4x256xf32> to vector<4x256xf32>
    %c0_6 = arith.constant 0 : index
    %c0_7 = arith.constant 0 : index
    %c0_8 = arith.constant 0 : index
    %7 = vector.load %arg2[%c0_6, %c0_7, %c0_8] : memref<1x4x256xf32, #tpu.memory_space<vmem>>, vector<1x4x256xf32>
    %8 = vector.shape_cast %7 : vector<1x4x256xf32> to vector<4x256xf32>
    %9 = arith.truncf %8 : vector<4x256xf32> to vector<4x256xbf16>
    %c0_9 = arith.constant 0 : index
    %c0_10 = arith.constant 0 : index
    %c0_11 = arith.constant 0 : index
    %10 = vector.load %arg3[%c0_9, %c0_10, %c0_11] : memref<1x4x256xf32, #tpu.memory_space<vmem>>, vector<1x4x256xf32>
    %11 = vector.shape_cast %10 : vector<1x4x256xf32> to vector<4x256xf32>
    %12 = arith.truncf %11 : vector<4x256xf32> to vector<4x256xbf16>
    %c0_12 = arith.constant 0 : index
    %c0_13 = arith.constant 0 : index
    %13 = vector.load %arg5[%c0_12, %c0_13] : memref<4x4xf32, #tpu.memory_space<vmem>>, vector<4x4xf32>
    %cst = arith.constant dense<0.000000e+00> : vector<4x4xf32>
    %14 = tpu.matmul %9, %9, %cst {dimension_numbers = #tpu.dot_dimension_numbers<[1], [1], [0], [0], [0, 0, 1, 0], [], []>} : vector<4x256xbf16>, vector<4x256xbf16>, vector<4x4xf32> -> vector<4x4xf32>
    %15 = arith.addf %13, %14 : vector<4x4xf32>
    %c0_14 = arith.constant 0 : index
    %c0_15 = arith.constant 0 : index
    %16 = vector.load %arg5[%c0_14, %c0_15] : memref<4x4xf32, #tpu.memory_space<vmem>>, vector<4x4xf32>
    tpu.vector_store %arg5[%c0_14, %c0_15], %15 {strides = array<i32>} : memref<4x4xf32, #tpu.memory_space<vmem>>, vector<4x4xf32>,
    %c0_16 = arith.constant 0 : index
    %c0_17 = arith.constant 0 : index
    %17 = vector.load %arg6[%c0_16, %c0_17] : memref<4x4xf32, #tpu.memory_space<vmem>>, vector<4x4xf32>
    %cst_18 = arith.constant dense<0.000000e+00> : vector<4x4xf32>
    %18 = tpu.matmul %12, %12, %cst_18 {dimension_numbers = #tpu.dot_dimension_numbers<[1], [1], [0], [0], [0, 0, 1, 0], [], []>} : vector<4x256xbf16>, vector<4x256xbf16>, vector<4x4xf32> -> vector<4x4xf32>
    %19 = arith.addf %17, %18 : vector<4x4xf32>
    %c0_19 = arith.constant 0 : index
    %c0_20 = arith.constant 0 : index
    %20 = vector.load %arg6[%c0_19, %c0_20] : memref<4x4xf32, #tpu.memory_space<vmem>>, vector<4x4xf32>
    tpu.vector_store %arg6[%c0_19, %c0_20], %19 {strides = array<i32>} : memref<4x4xf32, #tpu.memory_space<vmem>>, vector<4x4xf32>,
    %c0_21 = arith.constant 0 : index
    %c0_22 = arith.constant 0 : index
    %21 = vector.load %arg7[%c0_21, %c0_22] : memref<4x4xf32, #tpu.memory_space<vmem>>, vector<4x4xf32>
    %cst_23 = arith.constant dense<0.000000e+00> : vector<4x4xf32>
    %22 = tpu.matmul %9, %12, %cst_23 {dimension_numbers = #tpu.dot_dimension_numbers<[1], [1], [0], [0], [0, 0, 1, 0], [], []>} : vector<4x256xbf16>, vector<4x256xbf16>, vector<4x4xf32> -> vector<4x4xf32>
    %23 = arith.addf %21, %22 : vector<4x4xf32>
    %c0_24 = arith.constant 0 : index
    %c0_25 = arith.constant 0 : index
    %24 = vector.load %arg7[%c0_24, %c0_25] : memref<4x4xf32, #tpu.memory_space<vmem>>, vector<4x4xf32>
    tpu.vector_store %arg7[%c0_24, %c0_25], %23 {strides = array<i32>} : memref<4x4xf32, #tpu.memory_space<vmem>>, vector<4x4xf32>,
    %25 = arith.mulf %4, %4 : vector<4x256xf32>
    %26 = arith.mulf %6, %6 : vector<4x256xf32>
    %c0_26 = arith.constant 0 : index
    %c0_27 = arith.constant 0 : index
    %27 = vector.load %arg8[%c0_26, %c0_27] : memref<4x128xf32, #tpu.memory_space<vmem>>, vector<4x128xf32>
    %28 = vector.extract_strided_slice %4 {offsets = [0, 0], sizes = [4, 128], strides = [1, 1]} : vector<4x256xf32> to vector<4x128xf32>
    %29 = vector.extract_strided_slice %4 {offsets = [0, 128], sizes = [4, 128], strides = [1, 1]} : vector<4x256xf32> to vector<4x128xf32>
    %30 = arith.addf %28, %29 : vector<4x128xf32>
    %31 = arith.addf %27, %30 : vector<4x128xf32>
    %c0_28 = arith.constant 0 : index
    %c0_29 = arith.constant 0 : index
    %32 = vector.load %arg8[%c0_28, %c0_29] : memref<4x128xf32, #tpu.memory_space<vmem>>, vector<4x128xf32>
    tpu.vector_store %arg8[%c0_28, %c0_29], %31 {strides = array<i32>} : memref<4x128xf32, #tpu.memory_space<vmem>>, vector<4x128xf32>,
    %c0_30 = arith.constant 0 : index
    %c0_31 = arith.constant 0 : index
    %33 = vector.load %arg9[%c0_30, %c0_31] : memref<4x128xf32, #tpu.memory_space<vmem>>, vector<4x128xf32>
    %34 = vector.extract_strided_slice %25 {offsets = [0, 0], sizes = [4, 128], strides = [1, 1]} : vector<4x256xf32> to vector<4x128xf32>
    %35 = vector.extract_strided_slice %25 {offsets = [0, 128], sizes = [4, 128], strides = [1, 1]} : vector<4x256xf32> to vector<4x128xf32>
    %36 = arith.addf %34, %35 : vector<4x128xf32>
    %37 = arith.addf %33, %36 : vector<4x128xf32>
    %c0_32 = arith.constant 0 : index
    %c0_33 = arith.constant 0 : index
    %38 = vector.load %arg9[%c0_32, %c0_33] : memref<4x128xf32, #tpu.memory_space<vmem>>, vector<4x128xf32>
    tpu.vector_store %arg9[%c0_32, %c0_33], %37 {strides = array<i32>} : memref<4x128xf32, #tpu.memory_space<vmem>>, vector<4x128xf32>,
    %c0_34 = arith.constant 0 : index
    %c0_35 = arith.constant 0 : index
    %39 = vector.load %arg10[%c0_34, %c0_35] : memref<4x128xf32, #tpu.memory_space<vmem>>, vector<4x128xf32>
    %40 = arith.mulf %25, %4 : vector<4x256xf32>
    %41 = vector.extract_strided_slice %40 {offsets = [0, 0], sizes = [4, 128], strides = [1, 1]} : vector<4x256xf32> to vector<4x128xf32>
    %42 = vector.extract_strided_slice %40 {offsets = [0, 128], sizes = [4, 128], strides = [1, 1]} : vector<4x256xf32> to vector<4x128xf32>
    %43 = arith.addf %41, %42 : vector<4x128xf32>
    %44 = arith.addf %39, %43 : vector<4x128xf32>
    %c0_36 = arith.constant 0 : index
    %c0_37 = arith.constant 0 : index
    %45 = vector.load %arg10[%c0_36, %c0_37] : memref<4x128xf32, #tpu.memory_space<vmem>>, vector<4x128xf32>
    tpu.vector_store %arg10[%c0_36, %c0_37], %44 {strides = array<i32>} : memref<4x128xf32, #tpu.memory_space<vmem>>, vector<4x128xf32>,
    %c0_38 = arith.constant 0 : index
    %c0_39 = arith.constant 0 : index
    %46 = vector.load %arg11[%c0_38, %c0_39] : memref<4x128xf32, #tpu.memory_space<vmem>>, vector<4x128xf32>
    %47 = vector.extract_strided_slice %6 {offsets = [0, 0], sizes = [4, 128], strides = [1, 1]} : vector<4x256xf32> to vector<4x128xf32>
    %48 = vector.extract_strided_slice %6 {offsets = [0, 128], sizes = [4, 128], strides = [1, 1]} : vector<4x256xf32> to vector<4x128xf32>
    %49 = arith.addf %47, %48 : vector<4x128xf32>
    %50 = arith.addf %46, %49 : vector<4x128xf32>
    %c0_40 = arith.constant 0 : index
    %c0_41 = arith.constant 0 : index
    %51 = vector.load %arg11[%c0_40, %c0_41] : memref<4x128xf32, #tpu.memory_space<vmem>>, vector<4x128xf32>
    tpu.vector_store %arg11[%c0_40, %c0_41], %50 {strides = array<i32>} : memref<4x128xf32, #tpu.memory_space<vmem>>, vector<4x128xf32>,
    %c0_42 = arith.constant 0 : index
    %c0_43 = arith.constant 0 : index
    %52 = vector.load %arg12[%c0_42, %c0_43] : memref<4x128xf32, #tpu.memory_space<vmem>>, vector<4x128xf32>
    %53 = vector.extract_strided_slice %26 {offsets = [0, 0], sizes = [4, 128], strides = [1, 1]} : vector<4x256xf32> to vector<4x128xf32>
    %54 = vector.extract_strided_slice %26 {offsets = [0, 128], sizes = [4, 128], strides = [1, 1]} : vector<4x256xf32> to vector<4x128xf32>
    %55 = arith.addf %53, %54 : vector<4x128xf32>
    %56 = arith.addf %52, %55 : vector<4x128xf32>
    %c0_44 = arith.constant 0 : index
    %c0_45 = arith.constant 0 : index
    %57 = vector.load %arg12[%c0_44, %c0_45] : memref<4x128xf32, #tpu.memory_space<vmem>>, vector<4x128xf32>
    tpu.vector_store %arg12[%c0_44, %c0_45], %56 {strides = array<i32>} : memref<4x128xf32, #tpu.memory_space<vmem>>, vector<4x128xf32>,
    %c0_46 = arith.constant 0 : index
    %c0_47 = arith.constant 0 : index
    %58 = vector.load %arg13[%c0_46, %c0_47] : memref<4x128xf32, #tpu.memory_space<vmem>>, vector<4x128xf32>
    %59 = arith.mulf %26, %6 : vector<4x256xf32>
    %60 = vector.extract_strided_slice %59 {offsets = [0, 0], sizes = [4, 128], strides = [1, 1]} : vector<4x256xf32> to vector<4x128xf32>
    %61 = vector.extract_strided_slice %59 {offsets = [0, 128], sizes = [4, 128], strides = [1, 1]} : vector<4x256xf32> to vector<4x128xf32>
    %62 = arith.addf %60, %61 : vector<4x128xf32>
    %63 = arith.addf %58, %62 : vector<4x128xf32>
    %c0_48 = arith.constant 0 : index
    %c0_49 = arith.constant 0 : index
    %64 = vector.load %arg13[%c0_48, %c0_49] : memref<4x128xf32, #tpu.memory_space<vmem>>, vector<4x128xf32>
    tpu.vector_store %arg13[%c0_48, %c0_49], %63 {strides = array<i32>} : memref<4x128xf32, #tpu.memory_space<vmem>>, vector<4x128xf32>,
    %c0_50 = arith.constant 0 : index
    %c0_51 = arith.constant 0 : index
    %65 = vector.load %arg14[%c0_50, %c0_51] : memref<4x128xf32, #tpu.memory_space<vmem>>, vector<4x128xf32>
    %66 = arith.mulf %4, %6 : vector<4x256xf32>
    %67 = vector.extract_strided_slice %66 {offsets = [0, 0], sizes = [4, 128], strides = [1, 1]} : vector<4x256xf32> to vector<4x128xf32>
    %68 = vector.extract_strided_slice %66 {offsets = [0, 128], sizes = [4, 128], strides = [1, 1]} : vector<4x256xf32> to vector<4x128xf32>
    %69 = arith.addf %67, %68 : vector<4x128xf32>
    %70 = arith.addf %65, %69 : vector<4x128xf32>
    %c0_52 = arith.constant 0 : index
    %c0_53 = arith.constant 0 : index
    %71 = vector.load %arg14[%c0_52, %c0_53] : memref<4x128xf32, #tpu.memory_space<vmem>>, vector<4x128xf32>
    tpu.vector_store %arg14[%c0_52, %c0_53], %70 {strides = array<i32>} : memref<4x128xf32, #tpu.memory_space<vmem>>, vector<4x128xf32>,
    %cst_54 = arith.constant dense<0xFF800000> : vector<256xf32>
    %72 = vector.multi_reduction <maximumf>, %4, %cst_54 [0] : vector<4x256xf32> to vector<256xf32>
    %73 = vector.shape_cast %72 : vector<256xf32> to vector<1x256xf32>
    %74 = vector.broadcast %73 : vector<1x256xf32> to vector<4x256xf32>
    %75 = arith.subf %4, %74 : vector<4x256xf32>
    %cst_55 = arith.constant dense<0xFF800000> : vector<256xf32>
    %76 = vector.multi_reduction <maximumf>, %6, %cst_55 [0] : vector<4x256xf32> to vector<256xf32>
    %77 = vector.shape_cast %76 : vector<256xf32> to vector<1x256xf32>
    %78 = vector.broadcast %77 : vector<1x256xf32> to vector<4x256xf32>
    %79 = arith.subf %6, %78 : vector<4x256xf32>
    %80 = math.exp %75 : vector<4x256xf32>
    %81 = math.exp %79 : vector<4x256xf32>
    %cst_56 = arith.constant dense<0.000000e+00> : vector<256xf32>
    %82 = vector.multi_reduction <add>, %80, %cst_56 [0] : vector<4x256xf32> to vector<256xf32>
    %83 = vector.shape_cast %82 : vector<256xf32> to vector<1x256xf32>
    %cst_57 = arith.constant dense<0.000000e+00> : vector<256xf32>
    %84 = vector.multi_reduction <add>, %81, %cst_57 [0] : vector<4x256xf32> to vector<256xf32>
    %85 = vector.shape_cast %84 : vector<256xf32> to vector<1x256xf32>
    %cst_58 = arith.constant 1.000000e+00 : f32
    %86 = vector.broadcast %cst_58 : f32 to vector<1x256xf32>
    %87 = arith.divf %86, %85 : vector<1x256xf32>
    %88 = arith.mulf %83, %87 : vector<1x256xf32>
    %89 = math.log %88 : vector<1x256xf32>
    %90 = vector.broadcast %87 : vector<1x256xf32> to vector<4x256xf32>
    %91 = arith.mulf %81, %90 : vector<4x256xf32>
    %92 = arith.subf %79, %75 : vector<4x256xf32>
    %93 = vector.broadcast %89 : vector<1x256xf32> to vector<4x256xf32>
    %94 = arith.addf %92, %93 : vector<4x256xf32>
    %95 = arith.mulf %91, %94 : vector<4x256xf32>
    %c0_59 = arith.constant 0 : index
    %c0_60 = arith.constant 0 : index
    %96 = vector.load %arg15[%c0_59, %c0_60] : memref<4x128xf32, #tpu.memory_space<vmem>>, vector<4x128xf32>
    %97 = vector.extract_strided_slice %95 {offsets = [0, 0], sizes = [4, 128], strides = [1, 1]} : vector<4x256xf32> to vector<4x128xf32>
    %98 = vector.extract_strided_slice %95 {offsets = [0, 128], sizes = [4, 128], strides = [1, 1]} : vector<4x256xf32> to vector<4x128xf32>
    %99 = arith.addf %97, %98 : vector<4x128xf32>
    %100 = arith.addf %96, %99 : vector<4x128xf32>
    %c0_61 = arith.constant 0 : index
    %c0_62 = arith.constant 0 : index
    %101 = vector.load %arg15[%c0_61, %c0_62] : memref<4x128xf32, #tpu.memory_space<vmem>>, vector<4x128xf32>
    tpu.vector_store %arg15[%c0_61, %c0_62], %100 {strides = array<i32>} : memref<4x128xf32, #tpu.memory_space<vmem>>, vector<4x128xf32>,
    %c0_i32_63 = arith.constant 0 : i32
    %102 = arith.cmpi eq, %arg1, %c0_i32_63 : i32
    %103 = arith.extui %102 : i1 to i32
    %c0_i32_64 = arith.constant 0 : i32
    %104 = arith.cmpi ne, %103, %c0_i32_64 : i32
    scf.if %104 {
      %c0_65 = arith.constant 0 : index
      %c0_66 = arith.constant 0 : index
      %105 = vector.load %arg9[%c0_65, %c0_66] : memref<4x128xf32, #tpu.memory_space<vmem>>, vector<4x128xf32>
      %cst_67 = arith.constant dense<0.000000e+00> : vector<4xf32>
      %106 = vector.multi_reduction <add>, %105, %cst_67 [1] : vector<4x128xf32> to vector<4xf32>
      %107 = vector.shape_cast %106 : vector<4xf32> to vector<4x1xf32>
      %c0_68 = arith.constant 0 : index
      %c0_69 = arith.constant 0 : index
      %108 = vector.load %arg12[%c0_68, %c0_69] : memref<4x128xf32, #tpu.memory_space<vmem>>, vector<4x128xf32>
      %cst_70 = arith.constant dense<0.000000e+00> : vector<4xf32>
      %109 = vector.multi_reduction <add>, %108, %cst_70 [1] : vector<4x128xf32> to vector<4xf32>
      %110 = vector.shape_cast %109 : vector<4xf32> to vector<4x1xf32>
      %cst_71 = arith.constant 1.000000e-24 : f32
      %111 = vector.broadcast %cst_71 : f32 to vector<4x1xf32>
      %112 = arith.maximumf %107, %111 : vector<4x1xf32>
      %113 = math.rsqrt %112 : vector<4x1xf32>
      %cst_72 = arith.constant 1.000000e-24 : f32
      %114 = vector.broadcast %cst_72 : f32 to vector<4x1xf32>
      %115 = arith.maximumf %110, %114 : vector<4x1xf32>
      %116 = math.rsqrt %115 : vector<4x1xf32>
      %117 = arith.mulf %113, %113 : vector<4x1xf32>
      %118 = arith.mulf %116, %116 : vector<4x1xf32>
      %119 = tpu.iota {dimensions = array<i32: 0>} : vector<4x4xi32>
      %120 = tpu.iota {dimensions = array<i32: 1>} : vector<4x4xi32>
      %121 = arith.cmpi eq, %119, %120 : vector<4x4xi32>
      %122 = arith.extui %121 : vector<4x4xi1> to vector<4x4xi32>
      %123 = arith.sitofp %122 : vector<4x4xi32> to vector<4x4xf32>
      %124 = vector.broadcast %117 : vector<4x1xf32> to vector<4x4xf32>
      %125 = arith.mulf %123, %124 : vector<4x4xf32>
      %cst_73 = arith.constant dense<0.000000e+00> : vector<4xf32>
      %126 = vector.multi_reduction <add>, %125, %cst_73 [0] : vector<4x4xf32> to vector<4xf32>
      %127 = vector.shape_cast %126 : vector<4xf32> to vector<1x4xf32>
      %128 = vector.broadcast %118 : vector<4x1xf32> to vector<4x4xf32>
      %129 = arith.mulf %123, %128 : vector<4x4xf32>
      %cst_74 = arith.constant dense<0.000000e+00> : vector<4xf32>
      %130 = vector.multi_reduction <add>, %129, %cst_74 [0] : vector<4x4xf32> to vector<4xf32>
      %131 = vector.shape_cast %130 : vector<4xf32> to vector<1x4xf32>
      %c0_75 = arith.constant 0 : index
      %c0_76 = arith.constant 0 : index
      %132 = vector.load %arg5[%c0_75, %c0_76] : memref<4x4xf32, #tpu.memory_space<vmem>>, vector<4x4xf32>
      %c0_77 = arith.constant 0 : index
      %c0_78 = arith.constant 0 : index
      %133 = vector.load %arg5[%c0_77, %c0_78] : memref<4x4xf32, #tpu.memory_space<vmem>>, vector<4x4xf32>
      %134 = arith.mulf %132, %133 : vector<4x4xf32>
      %135 = vector.broadcast %117 : vector<4x1xf32> to vector<4x4xf32>
      %136 = arith.mulf %134, %135 : vector<4x4xf32>
      %137 = vector.broadcast %127 : vector<1x4xf32> to vector<4x4xf32>
      %138 = arith.mulf %136, %137 : vector<4x4xf32>
      %139 = vector.shape_cast %138 : vector<4x4xf32> to vector<1x4x4xf32>
      %cst_79 = arith.constant dense<0.000000e+00> : vector<1xf32>
      %140 = vector.multi_reduction <add>, %139, %cst_79 [1, 2] : vector<1x4x4xf32> to vector<1xf32>
      %141 = vector.shape_cast %140 : vector<1xf32> to vector<1x1x1xf32>
      %142 = vector.extract %141[0, 0, 0] : f32 from vector<1x1x1xf32>
      %c0_80 = arith.constant 0 : index
      %c0_81 = arith.constant 0 : index
      %143 = vector.load %arg6[%c0_80, %c0_81] : memref<4x4xf32, #tpu.memory_space<vmem>>, vector<4x4xf32>
      %c0_82 = arith.constant 0 : index
      %c0_83 = arith.constant 0 : index
      %144 = vector.load %arg6[%c0_82, %c0_83] : memref<4x4xf32, #tpu.memory_space<vmem>>, vector<4x4xf32>
      %145 = arith.mulf %143, %144 : vector<4x4xf32>
      %146 = vector.broadcast %118 : vector<4x1xf32> to vector<4x4xf32>
      %147 = arith.mulf %145, %146 : vector<4x4xf32>
      %148 = vector.broadcast %131 : vector<1x4xf32> to vector<4x4xf32>
      %149 = arith.mulf %147, %148 : vector<4x4xf32>
      %150 = vector.shape_cast %149 : vector<4x4xf32> to vector<1x4x4xf32>
      %cst_84 = arith.constant dense<0.000000e+00> : vector<1xf32>
      %151 = vector.multi_reduction <add>, %150, %cst_84 [1, 2] : vector<1x4x4xf32> to vector<1xf32>
      %152 = vector.shape_cast %151 : vector<1xf32> to vector<1x1x1xf32>
      %153 = vector.extract %152[0, 0, 0] : f32 from vector<1x1x1xf32>
      %c0_85 = arith.constant 0 : index
      %c0_86 = arith.constant 0 : index
      %154 = vector.load %arg7[%c0_85, %c0_86] : memref<4x4xf32, #tpu.memory_space<vmem>>, vector<4x4xf32>
      %c0_87 = arith.constant 0 : index
      %c0_88 = arith.constant 0 : index
      %155 = vector.load %arg7[%c0_87, %c0_88] : memref<4x4xf32, #tpu.memory_space<vmem>>, vector<4x4xf32>
      %156 = arith.mulf %154, %155 : vector<4x4xf32>
      %157 = vector.broadcast %117 : vector<4x1xf32> to vector<4x4xf32>
      %158 = arith.mulf %156, %157 : vector<4x4xf32>
      %159 = vector.broadcast %131 : vector<1x4xf32> to vector<4x4xf32>
      %160 = arith.mulf %158, %159 : vector<4x4xf32>
      %161 = vector.shape_cast %160 : vector<4x4xf32> to vector<1x4x4xf32>
      %cst_89 = arith.constant dense<0.000000e+00> : vector<1xf32>
      %162 = vector.multi_reduction <add>, %161, %cst_89 [1, 2] : vector<1x4x4xf32> to vector<1xf32>
      %163 = vector.shape_cast %162 : vector<1xf32> to vector<1x1x1xf32>
      %164 = vector.extract %163[0, 0, 0] : f32 from vector<1x1x1xf32>
      %165 = arith.addf %142, %153 : f32
      %cst_90 = arith.constant 5.000000e-01 : f32
      %166 = arith.mulf %cst_90, %165 : f32
      %167 = arith.subf %166, %164 : f32
      %c0_91 = arith.constant 0 : index
      %c0_92 = arith.constant 0 : index
      %168 = vector.load %arg8[%c0_91, %c0_92] : memref<4x128xf32, #tpu.memory_space<vmem>>, vector<4x128xf32>
      %cst_93 = arith.constant dense<0.000000e+00> : vector<4xf32>
      %169 = vector.multi_reduction <add>, %168, %cst_93 [1] : vector<4x128xf32> to vector<4xf32>
      %170 = vector.shape_cast %169 : vector<4xf32> to vector<4x1xf32>
      %c0_94 = arith.constant 0 : index
      %c0_95 = arith.constant 0 : index
      %171 = vector.load %arg10[%c0_94, %c0_95] : memref<4x128xf32, #tpu.memory_space<vmem>>, vector<4x128xf32>
      %cst_96 = arith.constant dense<0.000000e+00> : vector<4xf32>
      %172 = vector.multi_reduction <add>, %171, %cst_96 [1] : vector<4x128xf32> to vector<4xf32>
      %173 = vector.shape_cast %172 : vector<4xf32> to vector<4x1xf32>
      %c0_97 = arith.constant 0 : index
      %c0_98 = arith.constant 0 : index
      %174 = vector.load %arg11[%c0_97, %c0_98] : memref<4x128xf32, #tpu.memory_space<vmem>>, vector<4x128xf32>
      %cst_99 = arith.constant dense<0.000000e+00> : vector<4xf32>
      %175 = vector.multi_reduction <add>, %174, %cst_99 [1] : vector<4x128xf32> to vector<4xf32>
      %176 = vector.shape_cast %175 : vector<4xf32> to vector<4x1xf32>
      %c0_100 = arith.constant 0 : index
      %c0_101 = arith.constant 0 : index
      %177 = vector.load %arg13[%c0_100, %c0_101] : memref<4x128xf32, #tpu.memory_space<vmem>>, vector<4x128xf32>
      %cst_102 = arith.constant dense<0.000000e+00> : vector<4xf32>
      %178 = vector.multi_reduction <add>, %177, %cst_102 [1] : vector<4x128xf32> to vector<4xf32>
      %179 = vector.shape_cast %178 : vector<4xf32> to vector<4x1xf32>
      %c0_103 = arith.constant 0 : index
      %c0_104 = arith.constant 0 : index
      %180 = vector.load %arg14[%c0_103, %c0_104] : memref<4x128xf32, #tpu.memory_space<vmem>>, vector<4x128xf32>
      %cst_105 = arith.constant dense<0.000000e+00> : vector<4xf32>
      %181 = vector.multi_reduction <add>, %180, %cst_105 [1] : vector<4x128xf32> to vector<4xf32>
      %182 = vector.shape_cast %181 : vector<4xf32> to vector<4x1xf32>
      %183 = arith.mulf %170, %113 : vector<4x1xf32>
      %184 = vector.shape_cast %183 : vector<4x1xf32> to vector<1x4x1xf32>
      %cst_106 = arith.constant dense<0.000000e+00> : vector<1xf32>
      %185 = vector.multi_reduction <add>, %184, %cst_106 [1, 2] : vector<1x4x1xf32> to vector<1xf32>
      %186 = vector.shape_cast %185 : vector<1xf32> to vector<1x1x1xf32>
      %187 = vector.extract %186[0, 0, 0] : f32 from vector<1x1x1xf32>
      %188 = arith.mulf %107, %117 : vector<4x1xf32>
      %189 = vector.shape_cast %188 : vector<4x1xf32> to vector<1x4x1xf32>
      %cst_107 = arith.constant dense<0.000000e+00> : vector<1xf32>
      %190 = vector.multi_reduction <add>, %189, %cst_107 [1, 2] : vector<1x4x1xf32> to vector<1xf32>
      %191 = vector.shape_cast %190 : vector<1xf32> to vector<1x1x1xf32>
      %192 = vector.extract %191[0, 0, 0] : f32 from vector<1x1x1xf32>
      %193 = arith.mulf %173, %117 : vector<4x1xf32>
      %194 = arith.mulf %193, %113 : vector<4x1xf32>
      %195 = vector.shape_cast %194 : vector<4x1xf32> to vector<1x4x1xf32>
      %cst_108 = arith.constant dense<0.000000e+00> : vector<1xf32>
      %196 = vector.multi_reduction <add>, %195, %cst_108 [1, 2] : vector<1x4x1xf32> to vector<1xf32>
      %197 = vector.shape_cast %196 : vector<1xf32> to vector<1x1x1xf32>
      %198 = vector.extract %197[0, 0, 0] : f32 from vector<1x1x1xf32>
      %199 = arith.mulf %176, %116 : vector<4x1xf32>
      %200 = vector.shape_cast %199 : vector<4x1xf32> to vector<1x4x1xf32>
      %cst_109 = arith.constant dense<0.000000e+00> : vector<1xf32>
      %201 = vector.multi_reduction <add>, %200, %cst_109 [1, 2] : vector<1x4x1xf32> to vector<1xf32>
      %202 = vector.shape_cast %201 : vector<1xf32> to vector<1x1x1xf32>
      %203 = vector.extract %202[0, 0, 0] : f32 from vector<1x1x1xf32>
      %204 = arith.mulf %110, %118 : vector<4x1xf32>
      %205 = vector.shape_cast %204 : vector<4x1xf32> to vector<1x4x1xf32>
      %cst_110 = arith.constant dense<0.000000e+00> : vector<1xf32>
      %206 = vector.multi_reduction <add>, %205, %cst_110 [1, 2] : vector<1x4x1xf32> to vector<1xf32>
      %207 = vector.shape_cast %206 : vector<1xf32> to vector<1x1x1xf32>
      %208 = vector.extract %207[0, 0, 0] : f32 from vector<1x1x1xf32>
      %209 = arith.mulf %179, %118 : vector<4x1xf32>
      %210 = arith.mulf %209, %116 : vector<4x1xf32>
      %211 = vector.shape_cast %210 : vector<4x1xf32> to vector<1x4x1xf32>
      %cst_111 = arith.constant dense<0.000000e+00> : vector<1xf32>
      %212 = vector.multi_reduction <add>, %211, %cst_111 [1, 2] : vector<1x4x1xf32> to vector<1xf32>
      %213 = vector.shape_cast %212 : vector<1xf32> to vector<1x1x1xf32>
      %214 = vector.extract %213[0, 0, 0] : f32 from vector<1x1x1xf32>
      %215 = arith.mulf %182, %113 : vector<4x1xf32>
      %216 = arith.mulf %215, %116 : vector<4x1xf32>
      %217 = vector.shape_cast %216 : vector<4x1xf32> to vector<1x4x1xf32>
      %cst_112 = arith.constant dense<0.000000e+00> : vector<1xf32>
      %218 = vector.multi_reduction <add>, %217, %cst_112 [1, 2] : vector<1x4x1xf32> to vector<1xf32>
      %219 = vector.shape_cast %218 : vector<1xf32> to vector<1x1x1xf32>
      %220 = vector.extract %219[0, 0, 0] : f32 from vector<1x1x1xf32>
      %c0_113 = arith.constant 0 : index
      %c0_114 = arith.constant 0 : index
      %221 = vector.load %arg15[%c0_113, %c0_114] : memref<4x128xf32, #tpu.memory_space<vmem>>, vector<4x128xf32>
      %222 = vector.shape_cast %221 : vector<4x128xf32> to vector<1x4x128xf32>
      %cst_115 = arith.constant dense<0.000000e+00> : vector<1xf32>
      %223 = vector.multi_reduction <add>, %222, %cst_115 [1, 2] : vector<1x4x128xf32> to vector<1xf32>
      %224 = vector.shape_cast %223 : vector<1xf32> to vector<1x1x1xf32>
      %225 = vector.extract %224[0, 0, 0] : f32 from vector<1x1x1xf32>
      %226 = tpu.iota {dimensions = array<i32: 1>} : vector<1x128xi32>
      %cst_116 = arith.constant 0.000000e+00 : f32
      %227 = vector.broadcast %cst_116 : f32 to vector<1x128xf32>
      %c0_i32_117 = arith.constant 0 : i32
      %228 = vector.broadcast %c0_i32_117 : i32 to vector<1x128xi32>
      %229 = arith.cmpi eq, %226, %228 : vector<1x128xi32>
      %230 = arith.extui %229 : vector<1x128xi1> to vector<1x128xi32>
      %231 = arith.sitofp %230 : vector<1x128xi32> to vector<1x128xf32>
      %232 = vector.broadcast %167 : f32 to vector<1x128xf32>
      %233 = arith.mulf %232, %231 : vector<1x128xf32>
      %234 = arith.addf %227, %233 : vector<1x128xf32>
      %c1_i32 = arith.constant 1 : i32
      %235 = vector.broadcast %c1_i32 : i32 to vector<1x128xi32>
      %236 = arith.cmpi eq, %226, %235 : vector<1x128xi32>
      %237 = arith.extui %236 : vector<1x128xi1> to vector<1x128xi32>
      %238 = arith.sitofp %237 : vector<1x128xi32> to vector<1x128xf32>
      %239 = vector.broadcast %187 : f32 to vector<1x128xf32>
      %240 = arith.mulf %239, %238 : vector<1x128xf32>
      %241 = arith.addf %234, %240 : vector<1x128xf32>
      %c2_i32 = arith.constant 2 : i32
      %242 = vector.broadcast %c2_i32 : i32 to vector<1x128xi32>
      %243 = arith.cmpi eq, %226, %242 : vector<1x128xi32>
      %244 = arith.extui %243 : vector<1x128xi1> to vector<1x128xi32>
      %245 = arith.sitofp %244 : vector<1x128xi32> to vector<1x128xf32>
      %246 = vector.broadcast %192 : f32 to vector<1x128xf32>
      %247 = arith.mulf %246, %245 : vector<1x128xf32>
      %248 = arith.addf %241, %247 : vector<1x128xf32>
      %c3_i32 = arith.constant 3 : i32
      %249 = vector.broadcast %c3_i32 : i32 to vector<1x128xi32>
      %250 = arith.cmpi eq, %226, %249 : vector<1x128xi32>
      %251 = arith.extui %250 : vector<1x128xi1> to vector<1x128xi32>
      %252 = arith.sitofp %251 : vector<1x128xi32> to vector<1x128xf32>
      %253 = vector.broadcast %198 : f32 to vector<1x128xf32>
      %254 = arith.mulf %253, %252 : vector<1x128xf32>
      %255 = arith.addf %248, %254 : vector<1x128xf32>
      %c4_i32 = arith.constant 4 : i32
      %256 = vector.broadcast %c4_i32 : i32 to vector<1x128xi32>
      %257 = arith.cmpi eq, %226, %256 : vector<1x128xi32>
      %258 = arith.extui %257 : vector<1x128xi1> to vector<1x128xi32>
      %259 = arith.sitofp %258 : vector<1x128xi32> to vector<1x128xf32>
      %260 = vector.broadcast %203 : f32 to vector<1x128xf32>
      %261 = arith.mulf %260, %259 : vector<1x128xf32>
      %262 = arith.addf %255, %261 : vector<1x128xf32>
      %c5_i32 = arith.constant 5 : i32
      %263 = vector.broadcast %c5_i32 : i32 to vector<1x128xi32>
      %264 = arith.cmpi eq, %226, %263 : vector<1x128xi32>
      %265 = arith.extui %264 : vector<1x128xi1> to vector<1x128xi32>
      %266 = arith.sitofp %265 : vector<1x128xi32> to vector<1x128xf32>
      %267 = vector.broadcast %208 : f32 to vector<1x128xf32>
      %268 = arith.mulf %267, %266 : vector<1x128xf32>
      %269 = arith.addf %262, %268 : vector<1x128xf32>
      %c6_i32 = arith.constant 6 : i32
      %270 = vector.broadcast %c6_i32 : i32 to vector<1x128xi32>
      %271 = arith.cmpi eq, %226, %270 : vector<1x128xi32>
      %272 = arith.extui %271 : vector<1x128xi1> to vector<1x128xi32>
      %273 = arith.sitofp %272 : vector<1x128xi32> to vector<1x128xf32>
      %274 = vector.broadcast %214 : f32 to vector<1x128xf32>
      %275 = arith.mulf %274, %273 : vector<1x128xf32>
      %276 = arith.addf %269, %275 : vector<1x128xf32>
      %c7_i32 = arith.constant 7 : i32
      %277 = vector.broadcast %c7_i32 : i32 to vector<1x128xi32>
      %278 = arith.cmpi eq, %226, %277 : vector<1x128xi32>
      %279 = arith.extui %278 : vector<1x128xi1> to vector<1x128xi32>
      %280 = arith.sitofp %279 : vector<1x128xi32> to vector<1x128xf32>
      %281 = vector.broadcast %220 : f32 to vector<1x128xf32>
      %282 = arith.mulf %281, %280 : vector<1x128xf32>
      %283 = arith.addf %276, %282 : vector<1x128xf32>
      %c8_i32 = arith.constant 8 : i32
      %284 = vector.broadcast %c8_i32 : i32 to vector<1x128xi32>
      %285 = arith.cmpi eq, %226, %284 : vector<1x128xi32>
      %286 = arith.extui %285 : vector<1x128xi1> to vector<1x128xi32>
      %287 = arith.sitofp %286 : vector<1x128xi32> to vector<1x128xf32>
      %288 = vector.broadcast %225 : f32 to vector<1x128xf32>
      %289 = arith.mulf %288, %287 : vector<1x128xf32>
      %290 = arith.addf %283, %289 : vector<1x128xf32>
      %c0_118 = arith.constant 0 : index
      %c0_119 = arith.constant 0 : index
      %c0_120 = arith.constant 0 : index
      %291 = vector.load %arg4[%c0_118, %c0_119, %c0_120] : memref<1x1x128xf32, #tpu.memory_space<vmem>>, vector<1x1x128xf32>
      %292 = vector.shape_cast %291 : vector<1x1x128xf32> to vector<1x128xf32>
      %293 = vector.shape_cast %290 : vector<1x128xf32> to vector<1x1x128xf32>
      tpu.vector_store %arg4[%c0_118, %c0_119, %c0_120], %293 {strides = array<i32>} : memref<1x1x128xf32, #tpu.memory_space<vmem>>, vector<1x1x128xf32>,
    } else {
    }
    return
  }
  func.func @transform_0(%arg0: i32, %arg1: i32) -> (i32, i32, i32) {
    %c0_i32 = arith.constant 0 : i32
    %c0_i32_0 = arith.constant 0 : i32
    return %arg0, %c0_i32, %arg1 : i32, i32, i32
  }
  func.func @transform_1(%arg0: i32, %arg1: i32) -> (i32, i32, i32) {
    %c0_i32 = arith.constant 0 : i32
    %c0_i32_0 = arith.constant 0 : i32
    return %arg0, %c0_i32, %arg1 : i32, i32, i32
  }
  func.func @transform_2(%arg0: i32, %arg1: i32) -> (i32, i32, i32) {
    %c0_i32 = arith.constant 0 : i32
    %c0_i32_0 = arith.constant 0 : i32
    %c0_i32_1 = arith.constant 0 : i32
    return %arg0, %c0_i32, %c0_i32_0 : i32, i32, i32
  }
}

</mosaic_0001>

<bundles_post_ra>
// kernel: tpu_custom_call.1
= control target key start
LH: loop header
LB: loop body
LE: loop exit
PB: predicated region body
PF: predicated region fallthrough
CT: control target
= control target key end

     0   :  { %7 = vsyncpa [#allocation14], 0  ;;  %s1576_s0 = inlined_call_operand.hbm [shape: f32[2,4,256], index: 0, kind: input, shape index: {}]   ;;  %s1577_s1 = inlined_call_operand.hbm [shape: f32[2,4,256], index: 1, kind: input, shape index: {}]   ;;  %s1578_s2 = inlined_call_operand.hbm [shape: f32[2,1,128], index: 2, kind: output, shape index: {}]  }
   0x1   :  { %9 = vsyncpa [#allocation14 + $0x1], 0 }
   0x2   :  { %10 = vsyncpa [#allocation17], 0 }
   0x3   :  { %12 = vsyncpa [#allocation17 + $0x1], 0 }
   0x4   :  { %13 = vsyncpa [#allocation15], 0 }
   0x5   :  { %15 = vsyncpa [#allocation15 + $0x1], 0  ;;  %s1207_s9 = smov 0   ;;  %s1209_s10 = smov 0  }
   0x6   :  { %s1211_s11 = smov 0   ;;  %s1213_s12 = smov 0  }
   0x7   :  { %s1215_s13 = smov 0   ;;  %s1217_s14 = smov 0  }
   0x8 LB: > { %s904_s15 = sadd.s32 4294967295, %s1186_s14   ;;  %s905_s16 = sadd.s32 4294967294, %s1186_s14   ;;  %s1186_s14 = sphi %s1217_s14, %s21_s14   ;;  %s1182_s13 = sphi %s1215_s13, %s1598_s13   ;;  %s1178_s12 = sphi %s1213_s12, %s1597_s12   ;;  %s1174_s11 = sphi %s1211_s11, %s1596_s11   ;;  %s1170_s10 = sphi %s1209_s10, %s1595_s10   ;;  %s1166_s9 = sphi %s1207_s9, %s1594_s9  }
   0x9   : > { %s33_s17 = sadd.s32 1, %s1182_s13  ;;  %s42_s18 = sadd.s32 1, %s1174_s11 }
   0xa   : > { %p35_p0 = scmp.ge.s32.totalorder %s33_s17, 2  ;;  %p49_p1 = scmp.ne.s32.totalorder %s1174_s11, %s1170_s10 }
   0xb   : > { %p50_p2 = scmp.eq.s32.totalorder %s1186_s14, 0  ;;  %p55_p3 = scmp.ne.s32.totalorder %s1170_s10, %s1166_s9 }
   0xc   : > { %s1600_s17 = smov (%p35_p0, %s33_s17), 0  ;;  %p56_p5 = scmp.eq.s32.totalorder %s904_s15, 0 }
   0xd   : > { %p1248_p4 = por %p50_p2, %p49_p1  ;;  %s37_s20 = ssub.s32 %s1182_s13, %s1600_s17 }
   0xe   : > { %p107_p6 = scmp.eq.s32.totalorder %s904_s15, 1  ;;  %p40_p7 = scmp.eq.s32.totalorder %s37_s20, 0 }
   0xf   : > { %p1254_p8 = por %p56_p5, %p55_p3  ;;  %p113_p10 = scmp.eq.s32.totalorder %s905_s16, 1 }
  0x10   : > { %p1258_p9 = por %p107_p6, %p49_p1  ;;  %p971_p13 = scmp.lt.s32.totalorder %s1186_s14, 2 }
  0x11   : > { %s1582_s21 = scalar_select %p1254_p8, 1, 0 }
  0x12   : > { %s1583_s22 = scalar_select %p1258_p9, 1, 0 }
  0x13   : > { %s1263_s23 = scalar_select %p40_p7, %s1174_s11, %s42_s18  }
  0x14   : > { %p1265_p11 = por %p113_p10, %p55_p3  ;;  %s1272_s25 = sand.u32 1, %s1174_s11  }
  0x15   : > { %s908_s26 = sshll.u32 %s1272_s25, 3  ;;  %s930_s27 = sshll.u32 %s1182_s13, 7 }
  0x16   : > { %s1584_s24 = scalar_select %p1265_p11, 1, 0 }
  0x17   : > { %s1281_s30 = scalar_lea.hbm %s1576_s0, %s930_s27  ;;  %s137_s3 = scalar_lea.vmem [#allocation13], %s908_s26 }
  0x18   : > { %s147_s4 = sshll.u32 %s137_s3, 4  ;;  %p1289_p0 = pnand %p971_p13, %p1248_p4  ;;  %s1285_s4 = int_to_ptr.vmem [resolvable:$true] %s147_s4 }
  0x19   : > { %s134_s6 = scalar_lea.sflag [#allocation14], %s1272_s25  ;;  %s1040_s7 = scalar_lea.hbm %s1281_s30, 128 }
  0x1a   : > { %p1041_p3 = scmp.ne.s32.totalorder %s1281_s30, %s1040_s7  ;;  %p1042_p5 = pneg %p1289_p0 }
  0x1b   : > { %s1045_s16 = scalar_lea.hbm %s1576_s0, 256  ;;  %p1046_p4 = scmp.lt.u32.totalorder %s1281_s30, %s1576_s0 }
  0x1c   : > { %p1043_p6 = pnand %p1042_p5, %p1041_p3  ;;  %p1047_p10 = scmp.lt.u32.totalorder %s1045_s16, %s1040_s7 }
  0x1d   : > { %p1049_p12 = scmp.lt.u32.totalorder %s1040_s7, %s1281_s30 }
  0x1e   : > { %p1044_p7 = pneg %p1043_p6  ;;  %p1048_p13 = por %p1047_p10, %p1046_p4 }
  0x20   : > { %p1050_p1 = por %p1049_p12, %p1048_p13 }
  0x22   : > { %p1051_p2 = pnand %p1050_p1, %p1044_p7 }
  0x24   : > { %1054 = shalt.err (!%p1051_p2)
}
  0x25   : > { %s1055_s20 = scalar_lea.vmem %s1285_s4, 128  ;;  %s1188_s28 = smov [#allocation13]  }
  0x26   : > { %p1056_p3 = scmp.ne.s32.totalorder %s1285_s4, %s1055_s20  ;;  %s1060_s29 = sshll.u32 %s1188_s28, 4  ;;  %s1061_s29 = int_to_ptr.vmem [resolvable:$false] %s1060_s29 }
  0x27   : > { %s1062_s3 = scalar_lea.vmem %s1061_s29, 256  ;;  %p1063_p9 = scmp.lt.s32.totalorder %s1285_s4, %s1061_s29 }
  0x28   : > { %p1058_p6 = pnand %p1056_p3, %p1042_p5  ;;  %p1064_p4 = scmp.lt.s32.totalorder %s1062_s3, %s1055_s20 }
  0x2a   : > { %p1059_p11 = pneg %p1058_p6  ;;  %p1065_p10 = por %p1064_p4, %p1063_p9 }
  0x2c   : > { %p1066_p12 = pnand %p1065_p10, %p1059_p11 }
  0x2e   : > { %1069 = shalt.err (!%p1066_p12)
}
  0x2f   : > { %963 = dma.hbm_to_vmem [thread:$0]  (!%p1289_p0), %s1281_s30, 128, %s1285_s4, %s134_s6  }
  0x30   : > { %p1586_p1 = scmp.lt.s32.totalorder %s1186_s14, 3  ;;  %p1587_p2 = scmp.ge.s32.totalorder %s1186_s14, 1 }
  0x31   : > { %s1334_s16 = scalar_lea.hbm %s1577_s1, %s930_s27  ;;  %s158_s18 = scalar_lea.vmem [#allocation16], %s908_s26 }
  0x32   : > { %p1325_p7 = pnand %p1587_p2, %p1586_p1  ;;  %s168_s19 = sshll.u32 %s158_s18, 4  ;;  %s169_s19 = int_to_ptr.vmem [resolvable:$true] %s168_s19 }
  0x33   : > { %s155_s30 = scalar_lea.sflag [#allocation17], %s1272_s25  ;;  %s1070_s4 = scalar_lea.hbm %s1334_s16, 128 }
  0x34   : > { %s1588_s7 = scalar_select %p1325_p7, 1, 0 }
  0x35   : > { %p1071_p9 = scmp.ne.s32.totalorder %s1334_s16, %s1070_s4  ;;  %s1075_s27 = scalar_lea.hbm %s1577_s1, 256 }
  0x36   : > { %p1076_p3 = scmp.lt.u32.totalorder %s1334_s16, %s1577_s1  ;;  %p1077_p6 = scmp.lt.u32.totalorder %s1075_s27, %s1070_s4 }
  0x37   : > { %p1073_p11 = pnand %p1071_p9, %p1042_p5  ;;  %p1079_p10 = scmp.lt.u32.totalorder %s1070_s4, %s1334_s16 }
  0x38   : > { %p1078_p4 = por %p1077_p6, %p1076_p3 }
  0x39   : > { %p1074_p13 = pneg %p1073_p11 }
  0x3a   : > { %p1080_p12 = por %p1079_p10, %p1078_p4 }
  0x3c   : > { %p1081_p1 = pnand %p1080_p12, %p1074_p13 }
  0x3e   : > { %1084 = shalt.err (!%p1081_p1)
}
  0x3f   : > { %s1085_s25 = scalar_lea.vmem %s169_s19, 128  ;;  %s1189_s26 = smov [#allocation16]  }
  0x40   : > { %p1086_p2 = scmp.ne.s32.totalorder %s169_s19, %s1085_s25  ;;  %s1090_s3 = sshll.u32 %s1189_s26, 4  ;;  %s1091_s3 = int_to_ptr.vmem [resolvable:$false] %s1090_s3 }
  0x41   : > { %s1092_s8 = scalar_lea.vmem %s1091_s3, 256  ;;  %p1093_p8 = scmp.lt.s32.totalorder %s169_s19, %s1091_s3 }
  0x42   : > { %p1088_p9 = pnand %p1086_p2, %p1042_p5  ;;  %p1094_p7 = scmp.lt.s32.totalorder %s1092_s8, %s1085_s25 }
  0x44   : > { %p1089_p11 = pneg %p1088_p9  ;;  %p1095_p3 = por %p1094_p7, %p1093_p8 }
  0x46   : > { %p1096_p6 = pnand %p1095_p3, %p1089_p11 }
  0x48   : > { %1099 = shalt.err (!%p1096_p6)
}
  0x49   : > { %966 = dma.hbm_to_vmem [thread:$0]  (!%p1289_p0), %s1334_s16, 128, %s169_s19, %s155_s30  }
  0x4a   : > { %p1589_p13 = scmp.ne.s32.totalorder %s1588_s7, 0 }
  0x4b   : > { %s1361_s15 = sand.u32 (!%p1589_p13), 1, %s1170_s10   ;;  %p1590_p5 = scmp.ne.s32.totalorder (!%p1589_p13), %s1582_s21, 0 }
  0x4c   : > { %177 = sbr.rel (%p1589_p13) target bundleno = 576 (0x240), region = 28  ;;  %s915_s18 = sshll.u32 (!%p1589_p13), %s1361_s15, 3 }
  0x4d   : > { %s180_s4 = scalar_lea.sflag (!%p1589_p13), [#allocation14], %s1361_s15  ;;  %s183_s6 = scalar_lea.vmem (!%p1589_p13), [#allocation13], %s915_s18 }
  0x53   : > { %1153 = dma.done.wait (%p1590_p5), %s180_s4, 128  }
  0x54   : > { %1155 = vsyncadd (%p1590_p5), %s180_s4, 4294967168  ;;  %s189_s5 = scalar_lea.sflag [#allocation17], %s1361_s15  ;;  %s192_s16 = scalar_lea.vmem [#allocation16], %s915_s18 }
  0x55   : > { %1157 = dma.done.wait (%p1590_p5), %s189_s5, 128  }
  0x56   : > { %1159 = vsyncadd (%p1590_p5), %s189_s5, 4294967168  ;;  %v1190_v0 = vmov 0.0   ;;  %v1382_v1 = vld [vmem:[%s183_s6] sm:$0xff]  ;;  %vm430_vm0 = vcmask 1043456   ;;  %v1384_v2 = vld [vmem:[%s192_s16] sm:$0xff]  ;;  %vm224_vm1 = vcmask 27648  }
  0x57   : > { %235 = vst [vmem:[#allocation12] sm:$0xf] %v1190_v0  ;;  %228 = vst [vmem:[#allocation5] sm:$0xf] %v1190_v0  ;;  %v239_v3 = vcombine.high %v1382_v1, %v1382_v1  ;;  %v431_v4 = vsel %vm430_vm0, %v1382_v1, -inf  ;;  %v244_v5 = vcombine.high %v1384_v2, %v1384_v2  ;;  %v450_v6 = vsel %vm430_vm0, %v1384_v2, -inf }
  0x58   : > { %229 = vst [vmem:[#allocation6] sm:$0xf] %v1190_v0  ;;  %230 = vst [vmem:[#allocation7] sm:$0xf] %v1190_v0  ;;  %v432_v7 = vrot.slane %v431_v4, 4  ;;  %v451_v8 = vrot.slane %v450_v6, 4  ;;  %v1396_v9 = vpack.c.bf16 %v1382_v1, %v1382_v1  ;;  %v1400_v10 = vpack.c.bf16 %v1384_v2, %v1384_v2 }
  0x59   : > { %231 = vst [vmem:[#allocation8] sm:$0xf] %v1190_v0  ;;  %232 = vst [vmem:[#allocation9] sm:$0xf] %v1190_v0  ;;  %v242_v11 = vpack.c.bf16 %v239_v3, %v239_v3  ;;  %v438_v12 = vsel %vm430_vm0, %v239_v3, -inf  ;;  %v247_v13 = vpack.c.bf16 %v244_v5, %v244_v5  ;;  %v457_v14 = vsel %vm430_vm0, %v244_v5, -inf }
  0x5a   : > { %233 = vst [vmem:[#allocation10] sm:$0xf] %v1190_v0  ;;  %234 = vst [vmem:[#allocation11] sm:$0xf] %v1190_v0  ;;  %v433_v15 = vmax.f32 %v431_v4, %v432_v7  ;;  %v439_v16 = vrot.slane %v438_v12, 4  ;;  %v452_v17 = vmax.f32 %v450_v6, %v451_v8  ;;  %v458_v18 = vrot.slane %v457_v14, 4 }
  0x5b   : > { %249 = vmatprep.subr.bf16.mxu0 %v242_v11  ;;  %293 = vmatprep.subr.bf16.mxu1 %v247_v13  ;;  %v378_v19 = vmul.f32 %v1382_v1, %v1382_v1  ;;  %v379_v20 = vmul.f32 %v1384_v2, %v1384_v2  ;;  %v381_v21 = vrot.slane %v1382_v1, 4  ;;  %v402_v22 = vrot.slane %v1384_v2, 4  ;;  %225 = vst.msk [vmem:[#allocation2] sm:$0xf] %vm224_vm1, %v1190_v0  ;;  %s927_s6 = sshll.u32 %s1178_s12, 4  ;;  %s216_s5 = scalar_lea.vmem [#allocation18], %s1361_s15 }
  0x5c   : > { %v434_v23 = vrot.slane %v433_v15, 2  ;;  %v440_v24 = vmax.f32 %v438_v12, %v439_v16  ;;  %v453_v25 = vrot.slane %v452_v17, 2  ;;  %v459_v26 = vmax.f32 %v457_v14, %v458_v18  ;;  %250 = vmatpush1.bf16.xpose.msra.mxu0 %v1396_v9  ;;  %294 = vmatpush1.bf16.xpose.msra.mxu1 %v1400_v10  ;;  %226 = vst.msk [vmem:[#allocation3] sm:$0xf] %vm224_vm1, %v1190_v0  ;;  %s801_s16 = sshll.u32 %s216_s5, 4  ;;  %p1591_p0 = scmp.ne.s32.totalorder %s1583_s22, 0  ;;  %s1529_s16 = int_to_ptr.vmem [resolvable:$true] %s801_s16 }
  0x5d   : > { %281 = vmatprep.mubr.bf16.mxu0 %v242_v11  ;;  %325 = vmatprep.mubr.bf16.mxu1 %v247_v13  ;;  %v388_v29 = vrot.slane %v378_v19, 4  ;;  %v409_v30 = vrot.slane %v379_v20, 4  ;;  %v383_v31 = vadd.f32 %v381_v21, %v1382_v1  ;;  %v404_v32 = vadd.f32 %v402_v22, %v1384_v2  ;;  %227 = vst.msk [vmem:[#allocation4] sm:$0xf] %vm224_vm1, %v1190_v0  ;;  %s1191_s12 = smov [#allocation18]  }
  0x5e   : > { %v380_v27 = vld [vmem:[#allocation5] sm:$0xf]  ;;  %v435_v33 = vmax.f32 %v433_v15, %v434_v23  ;;  %v441_v34 = vrot.slane %v440_v24, 2  ;;  %v454_v35 = vmax.f32 %v452_v17, %v453_v25  ;;  %v460_v36 = vrot.slane %v459_v26, 2  ;;  %336 = vmatprep.subr.bf16.mxu0 %v247_v13 }
  0x5f   : > { %v386_v37 = vld [vmem:[#allocation6] sm:$0xf]  ;;  %v390_v39 = vadd.f32 %v388_v29, %v378_v19  ;;  %v411_v40 = vadd.f32 %v409_v30, %v379_v20  ;;  %v384_v41 = vadd.f32 %v383_v31, %v380_v27  ;;  %v394_v49 = vmul.f32 %v378_v19, %v1382_v1  ;;  %v393_v60 = vld [vmem:[#allocation7] sm:$0xf] }
  0x60   : > { %v401_v28 = vld [vmem:[#allocation8] sm:$0xf]  ;;  %v407_v38 = vld [vmem:[#allocation9] sm:$0xf]  ;;  %v436_v43 = vrot.slane %v435_v33, 1  ;;  %v442_v44 = vmax.f32 %v440_v24, %v441_v34  ;;  %v455_v45 = vrot.slane %v454_v35, 1  ;;  %v461_v46 = vmax.f32 %v459_v26, %v460_v36 }
  0x61   : > { %v405_v42 = vadd.f32 %v404_v32, %v401_v28  ;;  %v391_v47 = vadd.f32 %v390_v39, %v386_v37  ;;  %v412_v48 = vadd.f32 %v411_v40, %v407_v38  ;;  %385 = vst [vmem:[#allocation5] sm:$0xf] %v384_v41  ;;  %v423_v50 = vmul.f32 %v1384_v2, %v1382_v1  ;;  %v422_v61 = vld [vmem:[#allocation11] sm:$0xf]  ;;  %v414_v6 = vld [vmem:[#allocation10] sm:$0xf] }
  0x62   : > { %v437_v51 = vmax.f32 %v435_v33, %v436_v43  ;;  %v443_v52 = vrot.slane %v442_v44, 1  ;;  %v456_v53 = vmax.f32 %v454_v35, %v455_v45  ;;  %v462_v54 = vrot.slane %v461_v46, 1 }
  0x63   : > { %406 = vst [vmem:[#allocation8] sm:$0xf] %v405_v42  ;;  %282 = vmatmul.mubr.bf16.vlgmr.msra.gmra.mrb[0].mxu0 %v1396_v9  ;;  %326 = vmatmul.mubr.bf16.vlgmr.msra.gmra.mrb[0].mxu1 %v1400_v10  ;;  %392 = vst [vmem:[#allocation6] sm:$0xf] %v391_v47  ;;  %v396_v55 = vrot.slane %v394_v49, 4  ;;  %v425_v56 = vrot.slane %v423_v50, 4  ;;  %v415_v57 = vmul.f32 %v379_v20, %v1384_v2 }
  0x64   : > { %413 = vst [vmem:[#allocation9] sm:$0xf] %v412_v48  ;;  %v444_v58 = vmax.f32 %v442_v44, %v443_v52  ;;  %v463_v59 = vmax.f32 %v461_v46, %v462_v54  ;;  %337 = vmatpush1.bf16.xpose.msra.mxu0 %v1400_v10  ;;  %368 = vmatprep.mubr.bf16.mxu0 %v242_v11  ;;  %vm642_vm3 = vcmask 3072  }
  0x65   : > { %v398_v62 = vadd.f32 %v396_v55, %v394_v49  ;;  %v427_v63 = vadd.f32 %v425_v56, %v423_v50  ;;  %v417_v3 = vrot.slane %v415_v57, 4 }
  0x66   : > { %v447_v4 = vcombine.low %v437_v51, %v444_v58  ;;  %v466_v5 = vcombine.low %v456_v53, %v463_v59 }
  0x67   : > { %v399_v7 = vadd.f32 %v398_v62, %v393_v60  ;;  %v428_v8 = vadd.f32 %v427_v63, %v422_v61  ;;  %v419_v12 = vadd.f32 %v417_v3, %v415_v57 }
  0x68   : > { %v1422_v13 = vsub.f32 %v1382_v1, %v447_v4  ;;  %v1425_v14 = vsub.f32 %v1384_v2, %v466_v5  ;;  %v621_v15 = vld [vmem:[#allocation5] sm:$0xf] }
  0x69   : > { %v622_v10 = vsel %vm430_vm0, %v621_v15, 0.0  ;;  %400 = vst [vmem:[#allocation7] sm:$0xf] %v399_v7  ;;  %429 = vst [vmem:[#allocation11] sm:$0xf] %v428_v8  ;;  %v420_v11 = vadd.f32 %v419_v12, %v414_v6 }
  0x6a   : > { %v469_v16 = vmul.f32 1.442695, %v1422_v13  ;;  %v471_v17 = vmul.f32 1.442695, %v1425_v14  ;;  %v539_v18 = vld [vmem:[#allocation6] sm:$0xf]  ;;  %623 = vadd.xlane.f32.xlu1 %v622_v10  ;;  %v522_v7 = vsub.f32 %v1425_v14, %v1422_v13  ;;  %v553_v13 = vlaneseq }
  0x6b   : > { %369 = vmatmul.mubr.bf16.vlgmr.msra.gmra.mrb[4].mxu0 %v1396_v9  ;;  %v540_v1 = vsel %vm430_vm0, %v539_v18, 0.0  ;;  %v543_v19 = vld [vmem:[#allocation9] sm:$0xf]  ;;  %421 = vst [vmem:[#allocation10] sm:$0xf] %v420_v11 }
  0x6c   : > { %1024 = vpow2.f32 %v469_v16  ;;  %541 = vadd.xlane.f32.xlu0 %v540_v1  ;;  %v544_v2 = vsel %vm430_vm0, %v543_v19, 0.0  ;;  %v629_v20 = vld [vmem:[#allocation8] sm:$0xf]  ;;  %v529_v16 = vld [vmem:[#allocation12] sm:$0xf]  ;;  %v554_v14 = vshrl.u32 %v553_v13, 7 }
  0x6d   : > { %1026 = vpow2.f32 %v471_v17  ;;  %v630_v22 = vsel %vm430_vm0, %v629_v20, 0.0 }
  0x70   : > { %545 = vadd.xlane.f32.xlu0 %v544_v2  ;;  %v625_v21 = vld [vmem:[#allocation7] sm:$0xf]  ;;  %v637_v24 = vld [vmem:[#allocation11] sm:$0xf] }
  0x71   : > { %v626_v23 = vsel %vm430_vm0, %v625_v21, 0.0  ;;  %v638_v26 = vsel %vm430_vm0, %v637_v24, 0.0  ;;  %v1455_v21 = vand.u32 127, %v553_v13 }
  0x72   : > { %627 = vadd.xlane.f32.xlu1 %v626_v23  ;;  %v633_v25 = vld [vmem:[#allocation10] sm:$0xf] }
  0x73   : > { %v634_v9 = vsel %vm430_vm0, %v633_v25, 0.0  ;;  %vm557_vm2 = vcmp.eq.s32.totalorder %v554_v14, %v1455_v21  ;;  %vm733_vm4 = vcmp.eq.s32.totalorder %v1455_v21, 0  ;;  %vm739_vm5 = vcmp.eq.s32.totalorder %v1455_v21, 1 }
  0x74   : > { %631 = vadd.xlane.f32.xlu0 %v630_v22  ;;  %v917_v24 = vsel %vm557_vm2, 1.0, %v1190_v0  ;;  %vm745_vm6 = vcmp.eq.s32.totalorder %v1455_v21, 2  ;;  %vm751_vm7 = vcmp.eq.s32.totalorder %v1455_v21, 3  ;;  %vm757_vm8 = vcmp.eq.s32.totalorder %v1455_v21, 4 }
  0x75   : > { %vm763_vm9 = vcmp.eq.s32.totalorder %v1455_v21, 5  ;;  %vm769_vm10 = vcmp.eq.s32.totalorder %v1455_v21, 6  ;;  %vm775_vm11 = vcmp.eq.s32.totalorder %v1455_v21, 7  ;;  %vm781_vm12 = vcmp.eq.s32.totalorder %v1455_v21, 8 }
  0x76   : > { %v1025_v27 = vpop.eup %1024  ;;  %635 = vadd.xlane.f32.xlu1 %v634_v9 }
  0x77   : > { %v1027_v28 = vpop.eup %1026  ;;  %v474_v29 = vcombine.high %v1025_v27, %v1025_v27  ;;  %v476_v30 = vsel %vm430_vm0, %v1025_v27, 0.0 }
  0x78   : > { %v477_v31 = vrot.slane %v476_v30, 4  ;;  %v491_v32 = vcombine.high %v1027_v28, %v1027_v28  ;;  %v493_v33 = vsel %vm430_vm0, %v1027_v28, 0.0  ;;  %639 = vadd.xlane.f32.xlu0 %v638_v26 }
  0x79   : > { %v483_v34 = vsel %vm430_vm0, %v474_v29, 0.0  ;;  %v494_v35 = vrot.slane %v493_v33, 4 }
  0x7a   : > { %v484_v36 = vrot.slane %v483_v34, 4  ;;  %v500_v37 = vsel %vm430_vm0, %v491_v32, 0.0  ;;  %v478_v40 = vadd.f32 %v477_v31, %v476_v30 }
  0x7b   : > { %v495_v38 = vadd.f32 %v494_v35, %v493_v33  ;;  %v501_v39 = vrot.slane %v500_v37, 4  ;;  %v292_v35 = vld [vmem:[#allocation3] sm:$0xf] }
  0x7c   : > { %v485_v43 = vadd.f32 %v484_v36, %v483_v34  ;;  %v479_v46 = vrot.slane %v478_v40, 2  ;;  %v248_v34 = vld [vmem:[#allocation2] sm:$0xf] }
  0x7d   : > { %v496_v41 = vrot.slane %v495_v38, 2  ;;  %v502_v42 = vadd.f32 %v501_v39, %v500_v37 }
  0x7e   : > { %v486_v49 = vrot.slane %v485_v43, 2  ;;  %v480_v52 = vadd.f32 %v479_v46, %v478_v40 }
  0x7f   : > { %v497_v44 = vadd.f32 %v496_v41, %v495_v38  ;;  %v503_v45 = vrot.slane %v502_v42, 2 }
  0x80   : > { %v487_v54 = vadd.f32 %v486_v49, %v485_v43  ;;  %v481_v55 = vrot.slane %v480_v52, 1 }
  0x81   : > { %v498_v47 = vrot.slane %v497_v44, 1  ;;  %v504_v48 = vadd.f32 %v503_v45, %v502_v42 }
  0x82   : > { %v488_v56 = vrot.slane %v487_v54, 1  ;;  %v482_v57 = vadd.f32 %v481_v55, %v480_v52 }
  0x83   : > { %v499_v50 = vadd.f32 %v498_v47, %v497_v44  ;;  %v505_v51 = vrot.slane %v504_v48, 1 }
  0x84   : > { %v489_v58 = vadd.f32 %v488_v56, %v487_v54 }
  0x85   : > { %v506_v53 = vadd.f32 %v505_v51, %v504_v48  ;;  %1028 = vrcp.f32 %v499_v50  ;;  %v335_v50 = vld [vmem:[#allocation4] sm:$0xf] }
  0x87   : > { %1030 = vrcp.f32 %v506_v53 }
  0x8f   : > { %v1029_v59 = vpop.eup %1028 }
  0x90   : > { %v511_v60 = vmul.f32 %v1029_v59, %v482_v57 }
  0x91   : > { %v1031_v61 = vpop.eup %1030 }
  0x92   : > { %v512_v62 = vmul.f32 %v1031_v61, %v489_v58  ;;  %1032 = vlog2.f32 %v511_v60  ;;  %v519_v4 = vcombine.low %v1029_v59, %v1031_v61 }
  0x94   : > { %1034 = vlog2.f32 %v512_v62  ;;  %v521_v8 = vmul.f32 %v1027_v28, %v519_v4 }
  0x9c   : > { %v1033_v63 = vpop.eup %1032 }
  0x9d   : > { %v514_v3 = vmul.f32 0.6931472, %v1033_v63 }
  0x9e   : > { %v1035_v5 = vpop.eup %1034 }
  0x9f   : > { %v516_v6 = vmul.f32 0.6931472, %v1035_v5 }
  0xa1   : > { %v525_v12 = vcombine.low %v514_v3, %v516_v6 }
  0xa3   : > { %v527_v15 = vadd.f32 %v525_v12, %v522_v7 }
  0xa5   : > { %v528_v10 = vmul.f32 %v527_v15, %v521_v8 }
  0xa7   : > { %v531_v11 = vrot.slane %v528_v10, 4 }
  0xa9   : > { %v533_v17 = vadd.f32 %v531_v11, %v528_v10 }
  0xab   : > { %v534_v18 = vadd.f32 %v533_v17, %v529_v16 }
  0xad   : > { %535 = vst [vmem:[#allocation12] sm:$0xf] %v534_v18 }
  0xf7   : > { %v624_v51 = vpop.xlane.xlu1 %623 }
  0xf9   : > { %v1449_v1 = vpop.xlane.xlu0 %541 }
  0xfa   : > { %v547_v2 = vmax.f32 %v1449_v1, 1e-24 }
  0xfc   : > { %1036 = vrsqrt.f32 %v547_v2 }
  0xfd   : > { %v1451_v19 = vpop.xlane.xlu0 %545 }
  0xfe   : > { %v549_v20 = vmax.f32 %v1451_v19, 1e-24 }
  0xff   : > { %v628_v6 = vpop.xlane.xlu1 %627 }
 0x100   : > { %1038 = vrsqrt.f32 %v549_v20 }
 0x101   : > { %v632_v7 = vpop.xlane.xlu0 %631 }
 0x105   : > { %v640_v2 = vpop.xlane.xlu0 %639 }
 0x106   : > { %v1457_v22 = vpop.eup %1036 }
 0x107   : > { %v1465_v25 = vmul.f32 %v1457_v22, %v1457_v22  ;;  %v641_v15 = vmul.f32 %v1457_v22, %v624_v51 }
 0x109   : > { %v560_v27 = vmul.f32 %v917_v24, %v1465_v25  ;;  %v664_v10 = vmul.f32 %v628_v6, %v1465_v25  ;;  %v643_v20 = vsel %vm642_vm3, %v641_v15, 0.0 }
 0x10a   : > { %v1460_v23 = vpop.eup %1038 }
 0x10b   : > { %v1469_v9 = vmul.f32 %v1460_v23, %v1460_v23  ;;  %v561_v29 = vsel %vm224_vm1, %v560_v27, 0.0  ;;  %v665_v13 = vmul.f32 %v1457_v22, %v664_v10  ;;  %v653_v27 = vmul.f32 %v1465_v25, %v1449_v1 }
 0x10c   : > { %v562_v31 = vrot.slane %v561_v29, 4 }
 0x10d   : > { %v568_v26 = vmul.f32 %v917_v24, %v1469_v9 }
 0x10e   : > { %v563_v33 = vadd.f32 %v562_v31, %v561_v29  ;;  %v666_v29 = vsel %vm642_vm3, %v665_v13, 0.0  ;;  %v636_v31 = vpop.xlane.xlu1 %635 }
 0x10f   : > { %v569_v28 = vsel %vm224_vm1, %v568_v26, 0.0  ;;  %v710_v26 = vmul.f32 %v1457_v22, %v640_v2  ;;  %v654_v22 = vsel %vm642_vm3, %v653_v27, 0.0 }
 0x110   : > { %v570_v30 = vrot.slane %v569_v28, 4  ;;  %v564_v43 = vrot.slane %v563_v33, 2 }
 0x111   : > { %v711_v1 = vmul.f32 %v1460_v23, %v710_v26 }
 0x112   : > { %v571_v32 = vadd.f32 %v570_v30, %v569_v28  ;;  %v565_v49 = vadd.f32 %v564_v43, %v563_v33  ;;  %v687_v28 = vmul.f32 %v1469_v9, %v1451_v19  ;;  %v698_v33 = vmul.f32 %v636_v31, %v1469_v9 }
 0x113   : > { %v712_v19 = vsel %vm642_vm3, %v711_v1, 0.0 }
 0x114   : > { %v572_v42 = vrot.slane %v571_v32, 2  ;;  %v566_v56 = vrot.slane %v565_v49, 1 }
 0x116   : > { %v573_v48 = vadd.f32 %v572_v42, %v571_v32  ;;  %v567_v4 = vadd.f32 %v566_v56, %v565_v49  ;;  %v676_v32 = vmul.f32 %v1460_v23, %v632_v7 }
 0x118   : > { %v574_v55 = vrot.slane %v573_v48, 1 }
 0x11a   : > { %v575_v63 = vadd.f32 %v574_v55, %v573_v48 }
 0x136   : > { %v283_v36 = vpop.f32.mrb[0].mxu0  ;;  %v327_v37 = vpop.f32.mrb[0].mxu1 }
 0x137   : > { %v289_v38 = vadd.f32 %v283_v36, %v248_v34  ;;  %v333_v39 = vadd.f32 %v327_v37, %v292_v35  ;;  %v285_v40 = vpop.f32.mrb[1].mxu0  ;;  %v329_v41 = vpop.f32.mrb[1].mxu1  ;;  %v688_v34 = vsel %vm642_vm3, %v687_v28, 0.0  ;;  %v699_v35 = vmul.f32 %v1460_v23, %v698_v33  ;;  %v722_v36 = vld [vmem:[#allocation12] sm:$0xf] }
 0x138   : > { %v286_v44 = vpop.f32.mrb[2].mxu0  ;;  %v330_v45 = vpop.f32.mrb[2].mxu1 }
 0x139   : > { %291 = vst.msk [vmem:[#allocation2] sm:$0xf] %vm224_vm1, %v289_v38  ;;  %334 = vst.msk [vmem:[#allocation3] sm:$0xf] %vm224_vm1, %v333_v39  ;;  %v287_v46 = vpop.f32.mrb[3].mxu0  ;;  %v331_v47 = vpop.f32.mrb[3].mxu1 }
 0x13a   : > { %v700_v37 = vsel %vm642_vm3, %v699_v35, 0.0 }
 0x13e   : > { %v370_v52 = vpop.f32.mrb[4].mxu0 }
 0x13f   : > { %v376_v53 = vadd.f32 %v370_v52, %v335_v50  ;;  %v372_v54 = vpop.f32.mrb[5].mxu0 }
 0x140   : > { %v373_v57 = vpop.f32.mrb[6].mxu0  ;;  %v590_v58 = vld [vmem:[#allocation3] sm:$0xf]  ;;  %v576_v59 = vld [vmem:[#allocation2] sm:$0xf] }
 0x141   : > { %377 = vst.msk [vmem:[#allocation4] sm:$0xf] %vm224_vm1, %v376_v53  ;;  %v374_v60 = vpop.f32.mrb[7].mxu0  ;;  %v591_v61 = vmul.f32 %v590_v58, %v590_v58  ;;  %v577_v62 = vmul.f32 %v576_v59, %v576_v59 }
 0x143   : > { %v592_v3 = vmul.f32 %v591_v61, %v1469_v9  ;;  %v578_v5 = vmul.f32 %v577_v62, %v1465_v25  ;;  %v723_v9 = vsel %vm430_vm0, %v722_v36, 0.0 }
 0x145   : > { %v593_v8 = vmul.f32 %v592_v3, %v575_v63  ;;  %v579_v12 = vmul.f32 %v578_v5, %v567_v4 }
 0x147   : > { %v594_v11 = vsel %vm224_vm1, %v593_v8, 0.0  ;;  %v580_v16 = vsel %vm224_vm1, %v579_v12, 0.0 }
 0x148   : > { %595 = vadd.xlane.f32.xlu0 %v594_v11  ;;  %581 = vadd.xlane.f32.xlu1 %v580_v16  ;;  %v604_v17 = vld [vmem:[#allocation4] sm:$0xf] }
 0x149   : > { %v605_v18 = vmul.f32 %v604_v17, %v604_v17 }
 0x14b   : > { %v606_v14 = vmul.f32 %v605_v18, %v1465_v25  ;;  %v677_v25 = vsel %vm642_vm3, %v676_v32, 0.0 }
 0x14c   : > { %644 = vadd.xlane.f32.xlu0 %v643_v20 }
 0x14d   : > { %v607_v24 = vmul.f32 %v606_v14, %v575_v63 }
 0x14f   : > { %v608_v30 = vsel %vm224_vm1, %v607_v24, 0.0 }
 0x150   : > { %667 = vadd.xlane.f32.xlu0 %v666_v29  ;;  %609 = vadd.xlane.f32.xlu1 %v608_v30 }
 0x154   : > { %689 = vadd.xlane.f32.xlu0 %v688_v34  ;;  %655 = vadd.xlane.f32.xlu1 %v654_v22 }
 0x158   : > { %713 = vadd.xlane.f32.xlu0 %v712_v19  ;;  %678 = vadd.xlane.f32.xlu1 %v677_v25 }
 0x15c   : > { %701 = vadd.xlane.f32.xlu1 %v700_v37 }
 0x160   : > { %724 = vadd.xlane.f32.xlu1 %v723_v9 }
 0x1d5   : > { %v596_v38 = vpop.xlane.xlu0 %595  ;;  %v582_v39 = vpop.xlane.xlu1 %581 }
 0x1d6   : > { %v597_v40 = vrot.slane %v596_v38, 4  ;;  %v583_v41 = vrot.slane %v582_v39, 4 }
 0x1d8   : > { %v598_v42 = vadd.f32 %v597_v40, %v596_v38  ;;  %v584_v43 = vadd.f32 %v583_v41, %v582_v39 }
 0x1d9   : > { %v645_v44 = vpop.xlane.xlu0 %644 }
 0x1da   : > { %v599_v45 = vrot.slane %v598_v42, 2  ;;  %v585_v46 = vrot.slane %v584_v43, 2  ;;  %v646_v47 = vrot.slane %v645_v44, 4 }
 0x1dc   : > { %v647_v23 = vadd.f32 %v646_v47, %v645_v44  ;;  %v586_v48 = vadd.f32 %v585_v46, %v584_v43  ;;  %v600_v49 = vadd.f32 %v599_v45, %v598_v42 }
 0x1dd   : > { %v668_v50 = vpop.xlane.xlu0 %667  ;;  %v610_v51 = vpop.xlane.xlu1 %609 }
 0x1de   : > { %v648_v52 = vrot.slane %v647_v23, 2  ;;  %v669_v53 = vrot.slane %v668_v50, 4  ;;  %v611_v54 = vrot.slane %v610_v51, 4  ;;  %v587_v55 = vrot.slane %v586_v48, 1 }
 0x1df   : > { %v601_v56 = vrot.slane %v600_v49, 1 }
 0x1e0   : > { %v670_v57 = vadd.f32 %v669_v53, %v668_v50  ;;  %v612_v58 = vadd.f32 %v611_v54, %v610_v51  ;;  %v588_v59 = vadd.f32 %v587_v55, %v586_v48  ;;  %v649_v63 = vadd.f32 %v648_v52, %v647_v23 }
 0x1e1   : > { %v690_v60 = vpop.xlane.xlu0 %689  ;;  %v656_v61 = vpop.xlane.xlu1 %655  ;;  %v602_v62 = vadd.f32 %v601_v56, %v600_v49  ;;  %v918_v52 = vsel %vm733_vm4, 1.0, %v1190_v0  ;;  %v919_v53 = vsel %vm739_vm5, 1.0, %v1190_v0  ;;  %v920_v55 = vsel %vm745_vm6, 1.0, %v1190_v0 }
 0x1e2   : > { %v671_v3 = vrot.slane %v670_v57, 2  ;;  %v613_v4 = vrot.slane %v612_v58, 2  ;;  %v691_v5 = vrot.slane %v690_v60, 4  ;;  %v657_v6 = vrot.slane %v656_v61, 4  ;;  %932 = vpush %v588_v59 }
 0x1e3   : > { %934 = vpush %v602_v62  ;;  %v650_v11 = vrot.slane %v649_v63, 1 }
 0x1e4   : > { %v692_v7 = vadd.f32 %v691_v5, %v690_v60  ;;  %v658_v8 = vadd.f32 %v657_v6, %v656_v61  ;;  %v614_v12 = vadd.f32 %v613_v4, %v612_v58  ;;  %v672_v16 = vadd.f32 %v671_v3, %v670_v57 }
 0x1e5   : > { %v714_v15 = vpop.xlane.xlu0 %713  ;;  %v679_v10 = vpop.xlane.xlu1 %678  ;;  %v651_v29 = vadd.f32 %v650_v11, %v649_v63  ;;  %v921_v61 = vsel %vm751_vm7, 1.0, %v1190_v0  ;;  %v922_v3 = vsel %vm757_vm8, 1.0, %v1190_v0 }
 0x1e6   : > { %v693_v17 = vrot.slane %v692_v7, 2  ;;  %v659_v18 = vrot.slane %v658_v8, 2  ;;  %v715_v2 = vrot.slane %v714_v15, 4  ;;  %v680_v20 = vrot.slane %v679_v10, 4 }
 0x1e7   : > { %v615_v13 = vrot.slane %v614_v12, 1  ;;  %v673_v30 = vrot.slane %v672_v16, 1 }
 0x1e8   : > { %v716_v14 = vadd.f32 %v715_v2, %v714_v15  ;;  %v681_v24 = vadd.f32 %v680_v20, %v679_v10  ;;  %v660_v26 = vadd.f32 %v659_v18, %v658_v8  ;;  %v694_v31 = vadd.f32 %v693_v17, %v692_v7 }
 0x1e9   : > { %v702_v27 = vpop.xlane.xlu1 %701  ;;  %v616_v28 = vadd.f32 %v615_v13, %v614_v12  ;;  %v674_v37 = vadd.f32 %v673_v30, %v672_v16  ;;  %v923_v8 = vsel %vm763_vm9, 1.0, %v1190_v0  ;;  %v924_v10 = vsel %vm769_vm10, 1.0, %v1190_v0 }
 0x1ea   : > { %v717_v32 = vrot.slane %v716_v14, 2  ;;  %v682_v33 = vrot.slane %v681_v24, 2  ;;  %v703_v34 = vrot.slane %v702_v27, 4  ;;  %v661_v22 = vrot.slane %v660_v26, 1 }
 0x1eb   : > { %936 = vpush %v616_v28  ;;  %v695_v9 = vrot.slane %v694_v31, 1  ;;  %v925_v2 = vsel %vm775_vm11, 1.0, %v1190_v0 }
 0x1ec   : > { %v704_v1 = vadd.f32 %v703_v34, %v702_v27  ;;  %938 = vpush %v651_v29  ;;  %v662_v19 = vadd.f32 %v661_v22, %v660_v26  ;;  %v683_v25 = vadd.f32 %v682_v33, %v681_v24  ;;  %v718_v35 = vadd.f32 %v717_v32, %v716_v14 }
 0x1ed   : > { %v725_v36 = vpop.xlane.xlu1 %724  ;;  %v696_v44 = vadd.f32 %v695_v9, %v694_v31  ;;  %v926_v14 = vsel %vm781_vm12, 1.0, %v1190_v0 }
 0x1ee   : > { %v705_v38 = vrot.slane %v704_v1, 2  ;;  %v726_v39 = vrot.slane %v725_v36, 4  ;;  %940 = vpush %v662_v19  ;;  %v684_v40 = vrot.slane %v683_v25, 1  ;;  %v719_v45 = vrot.slane %v718_v35, 1 }
 0x1ef   : > { %942 = vpush %v674_v37 }
 0x1f0   : > { %v727_v41 = vadd.f32 %v726_v39, %v725_v36  ;;  %v685_v42 = vadd.f32 %v684_v40, %v683_v25  ;;  %v706_v43 = vadd.f32 %v705_v38, %v704_v1  ;;  %v720_v49 = vadd.f32 %v719_v45, %v718_v35 }
 0x1f2   : > { %v728_v46 = vrot.slane %v727_v41, 2  ;;  %944 = vpush %v685_v42  ;;  %v707_v47 = vrot.slane %v706_v43, 1 }
 0x1f3   : > { %946 = vpush %v696_v44 }
 0x1f4   : > { %v729_v23 = vadd.f32 %v728_v46, %v727_v41  ;;  %v708_v48 = vadd.f32 %v707_v47, %v706_v43 }
 0x1f6   : > { %948 = vpush %v708_v48  ;;  %v730_v50 = vrot.slane %v729_v23, 1 }
 0x1f7   : > { %950 = vpush %v720_v49 }
 0x1f8   : > { %v731_v51 = vadd.f32 %v730_v50, %v729_v23 }
 0x1fa   : > { %952 = vpush %v731_v51 }
 0x213   : > { %s933_s21 = spop %932 }
 0x214   : > { %s935_s7 = spop %934 }
 0x215   : > { %s618_s19 = sadd.f32 %s935_s7, %s933_s21 }
 0x217   : > { %s619_s30 = smul.f32 0.5, %s618_s19  ;;  %s1527_s19 = scalar_lea.hbm %s1578_s2, %s927_s6 }
 0x21c   : > { %s937_s20 = spop %936 }
 0x21d   : > { %s620_s27 = ssub.f32 %s619_s30, %s937_s20  ;;  %s939_s28 = spop %938 }
 0x21e   : > { %v742_v54 = vstv %s939_s28  ;;  %s789_s30 = scalar_lea.sflag [#allocation15], %s1361_s15  ;;  %s1100_s20 = scalar_lea.vmem %s1529_s16, 16 }
 0x21f   : > { %v736_v56 = vstv %s620_s27  ;;  %s941_s29 = spop %940  ;;  %v743_v58 = vmul.f32 %v919_v53, %v742_v54  ;;  %p1101_p8 = scmp.ne.s32.totalorder %s1529_s16, %s1100_s20 }
 0x220   : > { %v737_v57 = vmul.f32 %v918_v52, %v736_v56  ;;  %v748_v59 = vstv %s941_s29  ;;  %s943_s25 = spop %942  ;;  %s1104_s27 = sshll.u32 %s1191_s12, 4  ;;  %s1105_s27 = int_to_ptr.vmem [resolvable:$false] %s1104_s27 }
 0x221   : > { %v749_v60 = vmul.f32 %v920_v55, %v748_v59  ;;  %v754_v62 = vstv %s943_s25  ;;  %p1102_p7 = pnand %p1101_p8, %p1591_p0  ;;  %s1106_s28 = scalar_lea.vmem %s1105_s27, 32 }
 0x222   : > { %v744_v63 = vadd.f32 %v743_v58, %v737_v57  ;;  %v755_v5 = vmul.f32 %v921_v61, %v754_v62  ;;  %p1107_p10 = scmp.lt.s32.totalorder %s1529_s16, %s1105_s27  ;;  %p1108_p12 = scmp.lt.s32.totalorder %s1106_s28, %s1100_s20 }
 0x223   : > { %s945_s26 = spop %944  ;;  %p1103_p4 = pneg %p1102_p7 }
 0x224   : > { %v750_v4 = vadd.f32 %v749_v60, %v744_v63  ;;  %v760_v6 = vstv %s945_s26  ;;  %s947_s3 = spop %946  ;;  %p1109_p1 = por %p1108_p12, %p1107_p10 }
 0x225   : > { %v761_v7 = vmul.f32 %v922_v3, %v760_v6  ;;  %v766_v12 = vstv %s947_s3 }
 0x226   : > { %v756_v15 = vadd.f32 %v755_v5, %v750_v4  ;;  %v767_v16 = vmul.f32 %v923_v8, %v766_v12  ;;  %p1110_p2 = pnand %p1109_p1, %p1103_p4 }
 0x227   : > { %s949_s8 = spop %948 }
 0x228   : > { %v762_v11 = vadd.f32 %v761_v7, %v756_v15  ;;  %v772_v17 = vstv %s949_s8  ;;  %s951_s18 = spop %950 }
 0x229   : > { %v773_v18 = vmul.f32 %v924_v10, %v772_v17  ;;  %v778_v20 = vstv %s951_s18 }
 0x22a   : > { %v768_v13 = vadd.f32 %v767_v16, %v762_v11  ;;  %v779_v26 = vmul.f32 %v925_v2, %v778_v20 }
 0x22b   : > { %s953_s4 = spop %952 }
 0x22c   : > { %v774_v24 = vadd.f32 %v773_v18, %v768_v13  ;;  %v784_v27 = vstv %s953_s4 }
 0x22d   : > { %v785_v28 = vmul.f32 %v926_v14, %v784_v27 }
 0x22e   : > { %v780_v21 = vadd.f32 %v779_v26, %v774_v24 }
 0x230   : > { %v786_v29 = vadd.f32 %v785_v28, %v780_v21 }
 0x232   : > { %787 = vst [vmem:[%s216_s5] sm:$0x1] %v786_v29 }
 0x233   : > { %1113 = shalt.err (!%p1110_p2)
}
 0x234   : > { %s1114_s15 = scalar_lea.hbm %s1527_s19, 16  ;;  %s1118_s26 = scalar_lea.hbm %s1578_s2, 32 }
 0x235   : > { %p1115_p9 = scmp.ne.s32.totalorder %s1527_s19, %s1114_s15  ;;  %p1119_p6 = scmp.lt.u32.totalorder %s1527_s19, %s1578_s2 }
 0x236   : > { %p1120_p13 = scmp.lt.u32.totalorder %s1118_s26, %s1114_s15  ;;  %p1122_p8 = scmp.lt.u32.totalorder %s1114_s15, %s1527_s19 }
 0x237   : > { %p1116_p11 = pnand %p1115_p9, %p1591_p0 }
 0x238   : > { %p1121_p5 = por %p1120_p13, %p1119_p6 }
 0x239   : > { %p1117_p3 = pneg %p1116_p11 }
 0x23a   : > { %p1123_p7 = por %p1122_p8, %p1121_p5 }
 0x23c   : > { %p1124_p4 = pnand %p1123_p7, %p1117_p3 }
 0x23e   : > { %1127 = shalt.err (!%p1124_p4)
}
 0x23f   : > { %958 = dma.vmem_to_hbm [thread:$0]  (%p1591_p0), %s1529_s16, 16, %s1527_s19, %s789_s30  }
 0x240 PF: > { %s813_s18 = sand.u32 1, %s1166_s9   ;;  %p1592_p10 = scmp.ne.s32.totalorder %s1584_s24, 0 }
 0x241   : > { %p1593_p12 = scmp.ge.s32.totalorder %s1186_s14, 2  ;;  %s814_s4 = scalar_lea.sflag [#allocation15], %s813_s18 }
 0x243   : > { %p968_p1 = pnand %p1593_p12, %p1592_p10 }
 0x245   : > { %1161 = dma.done.wait (!%p968_p1), %s814_s4, 16  }
 0x246   : > { %1163 = vsyncadd (!%p968_p1), %s814_s4, 4294967280  ;;  %s21_s14 = sadd.s32 1, %s1186_s14   ;;  %s1594_s9 = smov %s1170_s10 }
 0x247   : > { %p18_p2 = scmp.ge.s32.totalorder %s21_s14, 4   ;;  %s1595_s10 = smov %s1174_s11 }
 0x248   : > { %s1596_s11 = smov %s1263_s23  ;;  %s1597_s12 = smov %s1182_s13 }
 0x249   : > { %s1598_s13 = smov %s1600_s17  ;;  %20 = sbr.rel (!%p18_p2) target bundleno = 8 (0x8), region = 94 }
 0x250   :  { %818 = vsyncpa [#allocation14], 1 }
 0x251   :  { %820 = vsyncpa [#allocation14 + $0x1], 1 }
 0x252   :  { %821 = vsyncpa [#allocation17], 1 }
 0x253   :  { %823 = vsyncpa [#allocation17 + $0x1], 1 }
 0x254   :  { %824 = vsyncpa [#allocation15], 1 }
 0x255   :  { %826 = vsyncpa [#allocation15 + $0x1], 1 }

</bundles_post_ra>
